<compile_context>
chip_gen: v7x
topology: tpu7x:2x2x1
jax: 0.10.0
libtpu: 0.0.40
codegen_flags: <defaults>
</compile_context>

<pallas_src>
import numpy as np
import jax
import jax.numpy as jnp
from jax import lax
from jax.experimental import pallas as pl
from jax.experimental.pallas import tpu as pltpu

_LANES = 128     # lane-dense merged output width (lane0 = logits, lane1 = time)
_NSTACK = 8      # stacked-weight columns (2 real, rest zero padding)


def _decision_kernel(x_ref, w_ref, s_ref, out_ref):
    """One block of Bt batch rows per grid step.

    x_ref  : (Bt, T, D)   f32 VMEM   lstm_out block (cast to bf16 in-kernel)
    w_ref  : (D, NSTACK)  bf16 VMEM  stacked weights (col0=linear.w, col1=fc1.w)
    s_ref  : (6,)         f32 SMEM   [linear_b, fc1_b, w, b, threshold, -0.5/sigma^2]
    out_ref: (Bt, 128)    f32 VMEM   lane0=decision_logits, lane1=decision_time
    """
    Bt, T, D = x_ref.shape
    L = out_ref.shape[1]

    lin_b = s_ref[0]
    fc1_b = s_ref[1]
    w_p   = s_ref[2]
    b_p   = s_ref[3]
    thr   = s_ref[4]
    neg_half_inv_s2 = s_ref[5]

    # --- hot path: both 4096->1 projections as one bf16 MXU matmul (M=Bt*T) ----
    x2 = x_ref[...].reshape(Bt * T, D).astype(jnp.bfloat16)
    proj = jnp.dot(x2, w_ref[...], preferred_element_type=jnp.float32)   # (Bt*T, NSTACK) f32
    proj = proj.reshape(Bt, T, _NSTACK)

    s_traj = (proj[:, :, 0] + lin_b) * w_p + b_p        # (Bt, T)  linear bias, then *w + b
    logit_traj = proj[:, :, 1] + fc1_b                  # (Bt, T)

    # --- cumsum over time as a lower-triangular matmul (rows batched) ----------
    k_idx = lax.broadcasted_iota(jnp.int32, (T, T), 0)
    t_idx = lax.broadcasted_iota(jnp.int32, (T, T), 1)
    cmask = (k_idx <= t_idx).astype(jnp.float32)        # cmask[k, t] = (k <= t)
    s_abs = jnp.abs(jnp.dot(s_traj, cmask, preferred_element_type=jnp.float32))  # (Bt, T)

    # --- DiffDecision.apply forward ---------------------------------------------
    # TODO(synk): DiffDecision's forward is not provided in the reference module;
    # implemented as the first time index where |cumsum| >= threshold (fallback
    # T-1).  dsdt_trajectory only feeds its custom backward, so it is not
    # materialized in this forward-only kernel (no custom_vjp).
    tvec = lax.broadcasted_iota(jnp.int32, (Bt, T), 1).astype(jnp.float32)
    cand = jnp.where(s_abs >= thr, tvec, jnp.float32(T - 1))
    dtime = jnp.min(cand, axis=1, keepdims=True)        # (Bt, 1)

    # --- normalized gaussian soft index over time -------------------------------
    d = dtime - tvec                                     # (Bt, T)
    soft = jnp.exp(d * d * neg_half_inv_s2)
    inv = pl.reciprocal(jnp.sum(soft, axis=1, keepdims=True), approx=True)  # EUP slot
    logits = jnp.sum(logit_traj * soft, axis=1, keepdims=True) * inv        # (Bt, 1)

    # Merged, lane-dense output: lane 0 = logits, lane 1 = decision_time.
    out_lane = lax.broadcasted_iota(jnp.int32, (Bt, L), 1)
    out_ref[...] = (jnp.where(out_lane == 0, logits, 0.0)
                    + jnp.where(out_lane == 1, dtime, 0.0))


def _pick_block_rows(B, T, D):
    """Rows per grid step: one block if it fits comfortably in VMEM, else a
    divisor of B that is a multiple of 8 (sublane constraint on the out block)."""
    bytes_per_row = T * D * 4                       # f32 activation
    budget = 8 * 1024 * 1024                        # per-buffer budget, safe on v7x
    max_rows = max(1, budget // bytes_per_row)
    if B <= max_rows:
        return B                                    # single step, no grid overhead
    best = None
    for cand in range(8, max_rows + 1, 8):
        if B % cand == 0:
            best = cand
    return best if best is not None else B          # fallback: single (large) block


def prepare_params(params, sigma=2.0):
    """Build the kernel-side constant operands ONCE (hoisted out of forward)."""
    D = params["linear_w"].shape[0]
    w_stack = jnp.zeros((D, _NSTACK), jnp.float32)
    w_stack = w_stack.at[:, 0].set(params["linear_w"].astype(jnp.float32))
    w_stack = w_stack.at[:, 1].set(params["fc1_w"].astype(jnp.float32))
    w_stack = w_stack.astype(jnp.bfloat16)

    scalars = jnp.stack([
        params["linear_b"], params["fc1_b"], params["w"], params["b"],
        params["threshold"], jnp.float32(-0.5 / (sigma * sigma)),
    ]).astype(jnp.float32)
    return w_stack, scalars


def alexnet_bn_lstm_wrapper_forward(lstm_out, w_stack, scalars):
    """Pallas equivalent of AlexNet_BN_LSTM_wrapper.forward (time_steps == T)."""
    B, T, D = lstm_out.shape
    Bt = _pick_block_rows(B, T, D)
    grid = (B // Bt,)

    out = pl.pallas_call(
        _decision_kernel,
        grid=grid,
        in_specs=[
            pl.BlockSpec((Bt, T, D), lambda i: (i, 0, 0)),            # lstm_out (f32)
            pl.BlockSpec((D, _NSTACK), lambda i: (0, 0)),             # stacked weights (bf16)
            pl.BlockSpec(memory_space=pltpu.MemorySpace.SMEM),        # scalar params
        ],
        out_specs=pl.BlockSpec((Bt, _LANES), lambda i: (i, 0)),
        out_shape=jax.ShapeDtypeStruct((B, _LANES), jnp.float32),
        compiler_params=pltpu.CompilerParams(
            dimension_semantics=("parallel",) if grid[0] > 1 else ("arbitrary",)),
    )(lstm_out, w_stack, scalars)

    logits = out[:, 0:1]     # (B, 1)  decision_logits
    dtime = out[:, 1]        # (B,)    decision_time
    return logits, dtime


def _reference_forward(lstm_out, params, sigma=2.0):
    """Pure-JAX reference at matched precision (bf16 projections, f32 epilogue)."""
    B, T, D = lstm_out.shape
    xb = lstm_out.astype(jnp.bfloat16).reshape(B * T, D)
    wlin = params["linear_w"].astype(jnp.bfloat16)
    wfc1 = params["fc1_w"].astype(jnp.bfloat16)

    s_traj = jnp.dot(xb, wlin, preferred_element_type=jnp.float32).reshape(B, T)
    s_traj = (s_traj + params["linear_b"]) * params["w"] + params["b"]
    s_abs = jnp.abs(jnp.cumsum(s_traj, axis=1))

    tvec = jnp.arange(T, dtype=jnp.float32)
    cand = jnp.where(s_abs >= params["threshold"], tvec[None, :], jnp.float32(T - 1))
    dtime = jnp.min(cand, axis=1)

    soft = jnp.exp(-0.5 * (dtime[:, None] - tvec[None, :]) ** 2 / sigma ** 2)
    soft = soft / soft.sum(axis=1, keepdims=True)

    logit_traj = jnp.dot(xb, wfc1, preferred_element_type=jnp.float32).reshape(B, T)
    logit_traj = logit_traj + params["fc1_b"]
    logits = jnp.sum(logit_traj * soft, axis=1, keepdims=True)
    return logits, dtime


if __name__ == "__main__":
    # Small shapes: batch=2, time_steps=8 (module built with time_steps=8),
    # feature dim fixed at 4096 by nn.Linear(4096, 1).
    B, T, D = 2, 8, 4096
    sigma = 2.0

    key = jax.random.PRNGKey(0)
    k_lw, k_lb, k_fw, k_fb, k_x = jax.random.split(key, 5)
    bound = 1.0 / float(np.sqrt(D))   # PyTorch default Linear init bound

    params = {
        "linear_w": jax.random.uniform(k_lw, (D,), jnp.float32, -bound, bound),
        "linear_b": jax.random.uniform(k_lb, (), jnp.float32, -bound, bound),
        "fc1_w":    jax.random.uniform(k_fw, (D,), jnp.float32, -bound, bound),
        "fc1_b":    jax.random.uniform(k_fb, (), jnp.float32, -bound, bound),
        "w":        jnp.float32(1.0),   # nn.Parameter(torch.ones((1, 1)))
        "b":        jnp.float32(0.0),   # nn.Parameter(torch.zeros((1, 1)))
        "threshold": jnp.float32(1.0),  # nn.Parameter(torch.tensor(1.0))
    }
    lstm_out = jax.random.normal(k_x, (B, T, D), jnp.float32)

    # Constant operands built once, outside the per-call path.
    w_stack, scalars = prepare_params(params, sigma=sigma)

    logits, dtime = alexnet_bn_lstm_wrapper_forward(lstm_out, w_stack, scalars)
    jax.block_until_ready((logits, dtime))

    ref_logits, ref_dtime = _reference_forward(lstm_out, params, sigma=sigma)
    assert logits.shape == (B, 1) and dtime.shape == (B,)
    assert np.allclose(np.asarray(logits), np.asarray(ref_logits), atol=5e-3, rtol=5e-3)
    assert np.allclose(np.asarray(dtime), np.asarray(ref_dtime), atol=1e-5)

    print("KERNEL_OK")
</pallas_src>

<mosaic_0001>
module attributes {stable_mosaic.version = 11 : i64} {
  func.func @_decision_kernel(%arg0: i32, %arg1: memref<2x8x4096xf32, #tpu.memory_space<vmem>>, %arg2: memref<4096x8xbf16, #tpu.memory_space<vmem>>, %arg3: memref<6xf32, #tpu.memory_space<smem>>, %arg4: memref<2x128xf32, #tpu.memory_space<vmem>>) attributes {dimension_semantics = [#tpu.dimension_semantics<arbitrary>], iteration_bounds = array<i64: 1>, scalar_prefetch = 0 : i64, scratch_operands = 0 : i64, tpu.core_type = #tpu.core_type<tc>, window_params = [{transform_indices = @transform_0, window_bounds = array<i64: 2, 8, 4096>}, {pipeline_mode = #tpu.pipeline_mode<synchronous>, transform_indices = @transform_1, window_bounds = array<i64: 4096, 8>}, {transform_indices = @transform_2, window_bounds = array<i64: 6>}, {transform_indices = @transform_3, window_bounds = array<i64: 2, 128>}]} {
    %c0 = arith.constant 0 : index
    %0 = memref.load %arg3[%c0] : memref<6xf32, #tpu.memory_space<smem>>
    %c1 = arith.constant 1 : index
    %1 = memref.load %arg3[%c1] : memref<6xf32, #tpu.memory_space<smem>>
    %c2 = arith.constant 2 : index
    %2 = memref.load %arg3[%c2] : memref<6xf32, #tpu.memory_space<smem>>
    %c3 = arith.constant 3 : index
    %3 = memref.load %arg3[%c3] : memref<6xf32, #tpu.memory_space<smem>>
    %c4 = arith.constant 4 : index
    %4 = memref.load %arg3[%c4] : memref<6xf32, #tpu.memory_space<smem>>
    %c5 = arith.constant 5 : index
    %5 = memref.load %arg3[%c5] : memref<6xf32, #tpu.memory_space<smem>>
    %c0_0 = arith.constant 0 : index
    %c0_1 = arith.constant 0 : index
    %c0_2 = arith.constant 0 : index
    %6 = vector.load %arg1[%c0_0, %c0_1, %c0_2] : memref<2x8x4096xf32, #tpu.memory_space<vmem>>, vector<2x8x4096xf32>
    %7 = vector.shape_cast %6 : vector<2x8x4096xf32> to vector<16x4096xf32>
    %8 = arith.truncf %7 : vector<16x4096xf32> to vector<16x4096xbf16>
    %c0_3 = arith.constant 0 : index
    %c0_4 = arith.constant 0 : index
    %9 = vector.load %arg2[%c0_3, %c0_4] : memref<4096x8xbf16, #tpu.memory_space<vmem>>, vector<4096x8xbf16>
    %cst = arith.constant dense<0.000000e+00> : vector<16x8xf32>
    %10 = tpu.matmul %8, %9, %cst {dimension_numbers = #tpu.dot_dimension_numbers<[1], [0], [0], [1], [0, 0, 1, 1], [], []>} : vector<16x4096xbf16>, vector<4096x8xbf16>, vector<16x8xf32> -> vector<16x8xf32>
    %11 = vector.shape_cast %10 : vector<16x8xf32> to vector<2x8x8xf32>
    %12 = vector.extract_strided_slice %11 {offsets = [0, 0, 0], sizes = [2, 8, 1], strides = [1, 1, 1]} : vector<2x8x8xf32> to vector<2x8x1xf32>
    %13 = vector.shape_cast %12 : vector<2x8x1xf32> to vector<2x8xf32>
    %14 = vector.broadcast %0 : f32 to vector<2x8xf32>
    %15 = arith.addf %13, %14 : vector<2x8xf32>
    %16 = vector.broadcast %2 : f32 to vector<2x8xf32>
    %17 = arith.mulf %15, %16 : vector<2x8xf32>
    %18 = vector.broadcast %3 : f32 to vector<2x8xf32>
    %19 = arith.addf %17, %18 : vector<2x8xf32>
    %20 = vector.extract_strided_slice %11 {offsets = [0, 0, 1], sizes = [2, 8, 1], strides = [1, 1, 1]} : vector<2x8x8xf32> to vector<2x8x1xf32>
    %21 = vector.shape_cast %20 : vector<2x8x1xf32> to vector<2x8xf32>
    %22 = vector.broadcast %1 : f32 to vector<2x8xf32>
    %23 = arith.addf %21, %22 : vector<2x8xf32>
    %24 = tpu.iota {dimensions = array<i32: 0>} : vector<8x8xi32>
    %25 = tpu.iota {dimensions = array<i32: 1>} : vector<8x8xi32>
    %26 = arith.cmpi sle, %24, %25 : vector<8x8xi32>
    %27 = arith.extui %26 : vector<8x8xi1> to vector<8x8xi32>
    %28 = arith.sitofp %27 : vector<8x8xi32> to vector<8x8xf32>
    %cst_5 = arith.constant dense<0.000000e+00> : vector<2x8xf32>
    %29 = tpu.matmul %19, %28, %cst_5 {dimension_numbers = #tpu.dot_dimension_numbers<[1], [0], [0], [1], [0, 0, 1, 1], [], []>} : vector<2x8xf32>, vector<8x8xf32>, vector<2x8xf32> -> vector<2x8xf32>
    %30 = math.absf %29 : vector<2x8xf32>
    %31 = tpu.iota {dimensions = array<i32: 1>} : vector<2x8xi32>
    %32 = arith.sitofp %31 : vector<2x8xi32> to vector<2x8xf32>
    %33 = vector.broadcast %4 : f32 to vector<2x8xf32>
    %34 = arith.cmpf oge, %30, %33 : vector<2x8xf32>
    %cst_6 = arith.constant 7.000000e+00 : f32
    %35 = vector.broadcast %cst_6 : f32 to vector<2x8xf32>
    %36 = arith.select %34, %32, %35 : vector<2x8xi1>, vector<2x8xf32>
    %cst_7 = arith.constant dense<0x7F800000> : vector<2xf32>
    %37 = vector.multi_reduction <minimumf>, %36, %cst_7 [1] : vector<2x8xf32> to vector<2xf32>
    %38 = vector.shape_cast %37 : vector<2xf32> to vector<2x1xf32>
    %39 = vector.broadcast %38 : vector<2x1xf32> to vector<2x8xf32>
    %40 = arith.subf %39, %32 : vector<2x8xf32>
    %41 = arith.mulf %40, %40 : vector<2x8xf32>
    %42 = vector.broadcast %5 : f32 to vector<2x8xf32>
    %43 = arith.mulf %41, %42 : vector<2x8xf32>
    %44 = math.exp %43 : vector<2x8xf32>
    %cst_8 = arith.constant dense<0.000000e+00> : vector<2xf32>
    %45 = vector.multi_reduction <add>, %44, %cst_8 [1] : vector<2x8xf32> to vector<2xf32>
    %46 = vector.shape_cast %45 : vector<2xf32> to vector<2x1xf32>
    %47 = tpu.reciprocal %46 {approx = true} : vector<2x1xf32> -> vector<2x1xf32>
    %48 = arith.mulf %23, %44 : vector<2x8xf32>
    %cst_9 = arith.constant dense<0.000000e+00> : vector<2xf32>
    %49 = vector.multi_reduction <add>, %48, %cst_9 [1] : vector<2x8xf32> to vector<2xf32>
    %50 = vector.shape_cast %49 : vector<2xf32> to vector<2x1xf32>
    %51 = arith.mulf %50, %47 : vector<2x1xf32>
    %52 = tpu.iota {dimensions = array<i32: 1>} : vector<2x128xi32>
    %c0_i32 = arith.constant 0 : i32
    %53 = vector.broadcast %c0_i32 : i32 to vector<2x128xi32>
    %54 = arith.cmpi eq, %52, %53 : vector<2x128xi32>
    %cst_10 = arith.constant 0.000000e+00 : f32
    %55 = vector.shape_cast %51 : vector<2x1xf32> to vector<2x1xf32>
    %56 = vector.broadcast %55 : vector<2x1xf32> to vector<2x128xf32>
    %57 = vector.broadcast %cst_10 : f32 to vector<2x128xf32>
    %58 = arith.select %54, %56, %57 : vector<2x128xi1>, vector<2x128xf32>
    %c1_i32 = arith.constant 1 : i32
    %59 = vector.broadcast %c1_i32 : i32 to vector<2x128xi32>
    %60 = arith.cmpi eq, %52, %59 : vector<2x128xi32>
    %cst_11 = arith.constant 0.000000e+00 : f32
    %61 = vector.shape_cast %38 : vector<2x1xf32> to vector<2x1xf32>
    %62 = vector.broadcast %61 : vector<2x1xf32> to vector<2x128xf32>
    %63 = vector.broadcast %cst_11 : f32 to vector<2x128xf32>
    %64 = arith.select %60, %62, %63 : vector<2x128xi1>, vector<2x128xf32>
    %65 = arith.addf %58, %64 : vector<2x128xf32>
    %c0_12 = arith.constant 0 : index
    %c0_13 = arith.constant 0 : index
    %66 = vector.load %arg4[%c0_12, %c0_13] : memref<2x128xf32, #tpu.memory_space<vmem>>, vector<2x128xf32>
    tpu.vector_store %arg4[%c0_12, %c0_13], %65 {strides = array<i32>} : memref<2x128xf32, #tpu.memory_space<vmem>>, vector<2x128xf32>,
    return
  }
  func.func @transform_0(%arg0: i32) -> (i32, i32, i32) {
    %c0_i32 = arith.constant 0 : i32
    %c0_i32_0 = arith.constant 0 : i32
    %c0_i32_1 = arith.constant 0 : i32
    return %arg0, %c0_i32, %c0_i32_0 : i32, i32, i32
  }
  func.func @transform_1(%arg0: i32) -> (i32, i32) {
    %c0_i32 = arith.constant 0 : i32
    %c0_i32_0 = arith.constant 0 : i32
    %c0_i32_1 = arith.constant 0 : i32
    return %c0_i32, %c0_i32_0 : i32, i32
  }
  func.func @transform_2(%arg0: i32) -> i32 {
    %c0_i32 = arith.constant 0 : i32
    %c0_i32_0 = arith.constant 0 : i32
    return %c0_i32 : i32
  }
  func.func @transform_3(%arg0: i32) -> (i32, i32) {
    %c0_i32 = arith.constant 0 : i32
    %c0_i32_0 = arith.constant 0 : i32
    return %arg0, %c0_i32 : i32, i32
  }
}

</mosaic_0001>

<bundles_post_ra>
// kernel: tpu_custom_call.1
= control target key start
LH: loop header
LB: loop body
LE: loop exit
PB: predicated region body
PF: predicated region fallthrough
CT: control target
= control target key end

     0   :  { %8 = vsyncpa [#allocation4], 0  ;;  %s4984_s0 = inlined_call_operand.vmem [shape: f32[2,8,4096], index: 0, kind: input, shape index: {}]   ;;  %s4985_s1 = inlined_call_operand.vmem [shape: bf16[4096,8], index: 1, kind: input, shape index: {}]   ;;  %s4986_s2 = inlined_call_operand.vmem [shape: f32[6], index: 2, kind: input, shape index: {}]   ;;  %s4987_s3 = inlined_call_operand.hbm [shape: f32[2,128], index: 3, kind: output, shape index: {}]  }
   0x1   :  { %9 = vsyncpa [#allocation3], 0  ;;  %s20_s14 = sshll.u32 %s4986_s2, 4  ;;  %s21_s14 = int_to_ptr.vmem [resolvable:$true] %s20_s14 }
   0x2   :  { %s3918_s15 = scalar_lea.vmem %s21_s14, 16  ;;  %p3923_p1 = scmp.lt.s32.totalorder %s21_s14, %s21_s14 }
   0x3   :  { %p3919_p0 = scmp.ne.s32.totalorder %s21_s14, %s3918_s15  ;;  %p3924_p2 = scmp.lt.s32.totalorder %s3918_s15, %s3918_s15 }
   0x5   :  { %p3925_p3 = por %p3924_p2, %p3923_p1 }
   0x7   :  { %p3926_p4 = pnand %p3925_p3, %p3919_p0 }
   0x9   :  { %3929 = shalt.err (!%p3926_p4)
}
   0xa   :  { %s3956_s16 = smov [#allocation2]  }
   0xb   :  { %23 = dma.vmem_to_smem %s21_s14, 16, %s3956_s16, [#allocation4]  }
   0xc   :  { %3952 = dma.done.wait [#allocation4], 16  }
   0xd   :  { %3953 = vsyncadd [#allocation4], 4294967280 }
   0xe   :  { %27 = sfence }
   0xf   :  { %v3658_v0 = vld [vmem:[%s4985_s1 + $0x40] sm:$0xff]   ;;  %v3662_v4 = vld [vmem:[%s4985_s1 + $0x48] sm:$0xff]   ;;  %v3666_v8 = vld [vmem:[%s4985_s1 + $0x50] sm:$0xff]   ;;  %s3027_s12 = sld [smem:[#allocation2 + $0x2]]  ;;  %s3028_s13 = sld [smem:[#allocation2 + $0x3]]  ;;  %vm3960_vm1 = vmmov 0  }
  0x10   :  { %v3659_v1 = vld [vmem:[%s4985_s1 + $0xc0] sm:$0xff]   ;;  %3290 = vmatprep.subr.bf16.mxu0 %v3658_v0  ;;  %v3663_v5 = vld [vmem:[%s4985_s1 + $0xc8] sm:$0xff]   ;;  %v3667_v9 = vld [vmem:[%s4985_s1 + $0xd0] sm:$0xff]   ;;  %vm2870_vm2 = vcmask 1041409   ;;  %vm2872_vm3 = vcmask 64512   ;;  %s3029_s14 = sld [smem:[#allocation2 + $0x4]] }
  0x11   :  { %v3660_v2 = vld [vmem:[%s4985_s1] sm:$0xff]   ;;  %3312 = vmatprep.subr.bf16.mxu1 %v3659_v1  ;;  %v3664_v6 = vld [vmem:[%s4985_s1 + $0x8] sm:$0xff]   ;;  %v3668_v10 = vld [vmem:[%s4985_s1 + $0x10] sm:$0xff]   ;;  %vm2950_vm4 = vcmask 58368   ;;  %s3030_s15 = sld [smem:[#allocation2 + $0x5]]  ;;  %s3026_s16 = sld [smem:[#allocation2 + $0x1]] }
  0x12   :  { %v3661_v3 = vld [vmem:[%s4985_s1 + $0x80] sm:$0xff]   ;;  %3291 = vmatpush3.bf16.msra.mxu0 %v3660_v2  ;;  %v3665_v7 = vld [vmem:[%s4985_s1 + $0x88] sm:$0xff]   ;;  %v3669_v11 = vld [vmem:[%s4985_s1 + $0x90] sm:$0xff]   ;;  %s3962_s17 = smov [#allocation5]  }
  0x13   :  { %3313 = vmatpush3.bf16.msra.mxu1 %v3661_v3  ;;  %3292 = vmatprep.subr.bf16.mxu0 %v3662_v4  ;;  %v3670_v12 = vld [vmem:[%s4985_s1 + $0x58] sm:$0xff]   ;;  %v3674_v16 = vld [vmem:[%s4985_s1 + $0x60] sm:$0xff]   ;;  %v3678_v20 = vld [vmem:[%s4985_s1 + $0x68] sm:$0xff]   ;;  %s3017_s18 = sshll.u32 %s3962_s17, 4  ;;  %s3018_s18 = int_to_ptr.vmem [resolvable:$true] %s3017_s18 }
  0x14   :  { %3314 = vmatprep.subr.bf16.mxu1 %v3663_v5  ;;  %v3671_v13 = vld [vmem:[%s4985_s1 + $0xd8] sm:$0xff]   ;;  %v3675_v17 = vld [vmem:[%s4985_s1 + $0xe0] sm:$0xff]   ;;  %v3679_v21 = vld [vmem:[%s4985_s1 + $0xe8] sm:$0xff]   ;;  %s3930_s19 = scalar_lea.vmem %s3018_s18, 32  ;;  %p3935_p6 = scmp.lt.s32.totalorder %s3018_s18, %s3018_s18 }
  0x15   :  { %v3672_v14 = vld [vmem:[%s4985_s1 + $0x18] sm:$0xff]   ;;  %v3676_v18 = vld [vmem:[%s4985_s1 + $0x20] sm:$0xff]   ;;  %v3680_v22 = vld [vmem:[%s4985_s1 + $0x28] sm:$0xff]   ;;  %p3931_p5 = scmp.ne.s32.totalorder %s3018_s18, %s3930_s19  ;;  %p3936_p7 = scmp.lt.s32.totalorder %s3930_s19, %s3930_s19 }
  0x16   :  { %3293 = vmatpush3.bf16.msra.mxu0 %v3664_v6  ;;  %v3673_v15 = vld [vmem:[%s4985_s1 + $0x98] sm:$0xff]   ;;  %v3677_v19 = vld [vmem:[%s4985_s1 + $0xa0] sm:$0xff]   ;;  %v3681_v23 = vld [vmem:[%s4985_s1 + $0xa8] sm:$0xff]  }
  0x17   :  { %3315 = vmatpush3.bf16.msra.mxu1 %v3665_v7  ;;  %3294 = vmatprep.subr.bf16.mxu0 %v3666_v8  ;;  %v3682_v24 = vld [vmem:[%s4985_s1 + $0x70] sm:$0xff]   ;;  %v3686_v28 = vld [vmem:[%s4985_s1 + $0x78] sm:$0xff]   ;;  %v36_v32 = vld [vmem:[%s4984_s0 + $0x8] sm:$0xff]  ;;  %p3937_p8 = por %p3936_p7, %p3935_p6 }
  0x18   :  { %3316 = vmatprep.subr.bf16.mxu1 %v3667_v9  ;;  %v3683_v25 = vld [vmem:[%s4985_s1 + $0xf0] sm:$0xff]   ;;  %v3687_v29 = vld [vmem:[%s4985_s1 + $0xf8] sm:$0xff]   ;;  %v68_v33 = vld [vmem:[%s4984_s0 + $0x108] sm:$0xff] }
  0x19   :  { %v3684_v26 = vld [vmem:[%s4985_s1 + $0x30] sm:$0xff]   ;;  %v3688_v30 = vld [vmem:[%s4985_s1 + $0x38] sm:$0xff]   ;;  %v100_v35 = vpack.c.bf16 %v68_v33, %v36_v32  ;;  %v35_v37 = vld [vmem:[%s4984_s0] sm:$0xff]  ;;  %p3938_p9 = pnand %p3937_p8, %p3931_p5 }
  0x1a   :  { %3295 = vmatpush3.bf16.msra.mxu0 %v3668_v10  ;;  %v3685_v27 = vld [vmem:[%s4985_s1 + $0xb0] sm:$0xff]   ;;  %v3689_v31 = vld [vmem:[%s4985_s1 + $0xb8] sm:$0xff]   ;;  %v67_v38 = vld [vmem:[%s4984_s0 + $0x100] sm:$0xff] }
  0x1b   :  { %3317 = vmatpush3.bf16.msra.mxu1 %v3669_v11  ;;  %3296 = vmatprep.subr.bf16.mxu0 %v3670_v12  ;;  %v38_v34 = vld [vmem:[%s4984_s0 + $0x18] sm:$0xff]  ;;  %v99_v40 = vpack.c.bf16 %v67_v38, %v35_v37  ;;  %v37_v41 = vld [vmem:[%s4984_s0 + $0x10] sm:$0xff]  ;;  %v3690_v44 = vld [vmem:[%s4985_s1 + $0x140] sm:$0xff]  }
  0x1c   :  { %3318 = vmatprep.subr.bf16.mxu1 %v3671_v13  ;;  %v70_v36 = vld [vmem:[%s4984_s0 + $0x118] sm:$0xff]  ;;  %v69_v42 = vld [vmem:[%s4984_s0 + $0x110] sm:$0xff]  ;;  %2211 = vmatprep.mubr.bf16.mxu0 %v100_v35  ;;  %v3691_v45 = vld [vmem:[%s4985_s1 + $0x1c0] sm:$0xff]  }
  0x1d   :  { %v102_v39 = vpack.c.bf16 %v70_v36, %v38_v34  ;;  %v101_v43 = vpack.c.bf16 %v69_v42, %v37_v41  ;;  %v3692_v46 = vld [vmem:[%s4985_s1 + $0x100] sm:$0xff]   ;;  %v3694_v48 = vld [vmem:[%s4985_s1 + $0x148] sm:$0xff]   ;;  %v3698_v52 = vld [vmem:[%s4985_s1 + $0x150] sm:$0xff]  }
  0x1e   :  { %3297 = vmatpush3.bf16.msra.mxu0 %v3672_v14  ;;  %v3693_v47 = vld [vmem:[%s4985_s1 + $0x180] sm:$0xff]   ;;  %v3695_v49 = vld [vmem:[%s4985_s1 + $0x1c8] sm:$0xff]   ;;  %v3699_v53 = vld [vmem:[%s4985_s1 + $0x1d0] sm:$0xff]  }
  0x1f   :  { %3319 = vmatpush3.bf16.msra.mxu1 %v3673_v15  ;;  %3298 = vmatprep.subr.bf16.mxu0 %v3674_v16  ;;  %v3696_v50 = vld [vmem:[%s4985_s1 + $0x108] sm:$0xff]   ;;  %v3700_v54 = vld [vmem:[%s4985_s1 + $0x110] sm:$0xff]   ;;  %v3702_v56 = vld [vmem:[%s4985_s1 + $0x158] sm:$0xff]  }
  0x20   :  { %3320 = vmatprep.subr.bf16.mxu1 %v3675_v17  ;;  %2252 = vmatprep.mubr.bf16.mxu1 %v102_v39  ;;  %v3697_v51 = vld [vmem:[%s4985_s1 + $0x188] sm:$0xff]   ;;  %v3701_v55 = vld [vmem:[%s4985_s1 + $0x190] sm:$0xff]   ;;  %v3703_v57 = vld [vmem:[%s4985_s1 + $0x1d8] sm:$0xff]  }
  0x21   :  { %v3704_v58 = vld [vmem:[%s4985_s1 + $0x118] sm:$0xff]   ;;  %v3706_v60 = vld [vmem:[%s4985_s1 + $0x160] sm:$0xff]   ;;  %v3710_v0 = vld [vmem:[%s4985_s1 + $0x168] sm:$0xff]  }
  0x22   :  { %3299 = vmatpush3.bf16.msra.mxu0 %v3676_v18  ;;  %v3705_v59 = vld [vmem:[%s4985_s1 + $0x198] sm:$0xff]   ;;  %v3707_v61 = vld [vmem:[%s4985_s1 + $0x1e0] sm:$0xff]   ;;  %v3711_v1 = vld [vmem:[%s4985_s1 + $0x1e8] sm:$0xff]  }
  0x23   :  { %3321 = vmatpush3.bf16.msra.mxu1 %v3677_v19  ;;  %3300 = vmatprep.subr.bf16.mxu0 %v3678_v20  ;;  %v3708_v62 = vld [vmem:[%s4985_s1 + $0x120] sm:$0xff]   ;;  %v3712_v2 = vld [vmem:[%s4985_s1 + $0x128] sm:$0xff]   ;;  %v3714_v4 = vld [vmem:[%s4985_s1 + $0x170] sm:$0xff]  }
  0x24   :  { %3322 = vmatprep.subr.bf16.mxu1 %v3679_v21  ;;  %v3709_v63 = vld [vmem:[%s4985_s1 + $0x1a0] sm:$0xff]   ;;  %v3713_v3 = vld [vmem:[%s4985_s1 + $0x1a8] sm:$0xff]   ;;  %v3715_v5 = vld [vmem:[%s4985_s1 + $0x1f0] sm:$0xff]  }
  0x25   :  { %v3716_v6 = vld [vmem:[%s4985_s1 + $0x130] sm:$0xff]   ;;  %v3718_v8 = vld [vmem:[%s4985_s1 + $0x178] sm:$0xff]   ;;  %v40_v12 = vld [vmem:[%s4984_s0 + $0x28] sm:$0xff] }
  0x26   :  { %3301 = vmatpush3.bf16.msra.mxu0 %v3680_v22  ;;  %v3717_v7 = vld [vmem:[%s4985_s1 + $0x1b0] sm:$0xff]   ;;  %v3719_v9 = vld [vmem:[%s4985_s1 + $0x1f8] sm:$0xff]   ;;  %v72_v13 = vld [vmem:[%s4984_s0 + $0x128] sm:$0xff] }
  0x27   :  { %3323 = vmatpush3.bf16.msra.mxu1 %v3681_v23  ;;  %3302 = vmatprep.subr.bf16.mxu0 %v3682_v24  ;;  %v3720_v10 = vld [vmem:[%s4985_s1 + $0x138] sm:$0xff]   ;;  %v104_v16 = vpack.c.bf16 %v72_v13, %v40_v12  ;;  %v39_v18 = vld [vmem:[%s4984_s0 + $0x20] sm:$0xff]  ;;  %v41_v20 = vld [vmem:[%s4984_s0 + $0x30] sm:$0xff] }
  0x28   :  { %3324 = vmatprep.subr.bf16.mxu1 %v3683_v25  ;;  %v3721_v11 = vld [vmem:[%s4985_s1 + $0x1b8] sm:$0xff]   ;;  %v71_v19 = vld [vmem:[%s4984_s0 + $0x120] sm:$0xff]  ;;  %v73_v22 = vld [vmem:[%s4984_s0 + $0x130] sm:$0xff] }
  0x29   :  { %v42_v14 = vld [vmem:[%s4984_s0 + $0x38] sm:$0xff]  ;;  %v103_v21 = vpack.c.bf16 %v71_v19, %v39_v18  ;;  %v105_v23 = vpack.c.bf16 %v73_v22, %v41_v20  ;;  %v3722_v24 = vld [vmem:[%s4985_s1 + $0x240] sm:$0xff]   ;;  %v3730_v32 = vld [vmem:[%s4985_s1 + $0x250] sm:$0xff]  }
  0x2a   :  { %3303 = vmatpush3.bf16.msra.mxu0 %v3684_v26  ;;  %v74_v15 = vld [vmem:[%s4984_s0 + $0x138] sm:$0xff]  ;;  %v3723_v25 = vld [vmem:[%s4985_s1 + $0x2c0] sm:$0xff]   ;;  %v3731_v33 = vld [vmem:[%s4985_s1 + $0x2d0] sm:$0xff]  }
  0x2b   :  { %3325 = vmatpush3.bf16.msra.mxu1 %v3685_v27  ;;  %3304 = vmatprep.subr.bf16.mxu0 %v3686_v28  ;;  %v106_v17 = vpack.c.bf16 %v74_v15, %v42_v14  ;;  %v3724_v26 = vld [vmem:[%s4985_s1 + $0x200] sm:$0xff]   ;;  %v3726_v28 = vld [vmem:[%s4985_s1 + $0x248] sm:$0xff]   ;;  %v3732_v34 = vld [vmem:[%s4985_s1 + $0x210] sm:$0xff]  }
  0x2c   :  { %3326 = vmatprep.subr.bf16.mxu1 %v3687_v29  ;;  %v3725_v27 = vld [vmem:[%s4985_s1 + $0x280] sm:$0xff]   ;;  %v3727_v29 = vld [vmem:[%s4985_s1 + $0x2c8] sm:$0xff]   ;;  %v3733_v35 = vld [vmem:[%s4985_s1 + $0x290] sm:$0xff]  }
  0x2d   :  { %v3734_v36 = vld [vmem:[%s4985_s1 + $0x258] sm:$0xff]   ;;  %v3739_v41 = vld [vmem:[%s4985_s1 + $0x2e0] sm:$0xff]   ;;  %v3762_v12 = vld [vmem:[%s4985_s1 + $0x350] sm:$0xff]  }
  0x2e   :  { %3305 = vmatpush3.bf16.msra.mxu0 %v3688_v30  ;;  %v3728_v30 = vld [vmem:[%s4985_s1 + $0x208] sm:$0xff]   ;;  %v3735_v37 = vld [vmem:[%s4985_s1 + $0x2d8] sm:$0xff]   ;;  %v3740_v42 = vld [vmem:[%s4985_s1 + $0x220] sm:$0xff]  }
  0x2f   :  { %3327 = vmatpush3.bf16.msra.mxu1 %v3689_v31  ;;  %3334 = vmatprep.subr.bf16.mxu0 %v3690_v44  ;;  %v3729_v31 = vld [vmem:[%s4985_s1 + $0x288] sm:$0xff]   ;;  %v3736_v38 = vld [vmem:[%s4985_s1 + $0x218] sm:$0xff]   ;;  %v3763_v13 = vld [vmem:[%s4985_s1 + $0x3d0] sm:$0xff]  }
  0x30   :  { %3356 = vmatprep.subr.bf16.mxu1 %v3691_v45  ;;  %v3737_v39 = vld [vmem:[%s4985_s1 + $0x298] sm:$0xff]   ;;  %v3742_v44 = vld [vmem:[%s4985_s1 + $0x268] sm:$0xff]   ;;  %v3764_v14 = vld [vmem:[%s4985_s1 + $0x310] sm:$0xff]  }
  0x31   :  { %2212 = vmatmul.mubr.bf16.vlgmr.msra.gmra.mrb[0].mxu0 %v99_v40  ;;  %v3738_v40 = vld [vmem:[%s4985_s1 + $0x260] sm:$0xff]   ;;  %v3743_v45 = vld [vmem:[%s4985_s1 + $0x2e8] sm:$0xff]   ;;  %v3765_v15 = vld [vmem:[%s4985_s1 + $0x390] sm:$0xff]  }
  0x32   :  { %2253 = vmatmul.mubr.bf16.vlgmr.msra.gmra.mrb[0].mxu1 %v101_v43  ;;  %3335 = vmatpush3.bf16.msra.mxu0 %v3692_v46  ;;  %v3741_v43 = vld [vmem:[%s4985_s1 + $0x2a0] sm:$0xff]   ;;  %v3744_v46 = vld [vmem:[%s4985_s1 + $0x228] sm:$0xff]   ;;  %v3768_v18 = vld [vmem:[%s4985_s1 + $0x318] sm:$0xff]  }
  0x33   :  { %3357 = vmatpush3.bf16.msra.mxu1 %v3693_v47  ;;  %3336 = vmatprep.subr.bf16.mxu0 %v3694_v48  ;;  %v3745_v47 = vld [vmem:[%s4985_s1 + $0x2a8] sm:$0xff]   ;;  %v3746_v48 = vld [vmem:[%s4985_s1 + $0x270] sm:$0xff]   ;;  %v3769_v19 = vld [vmem:[%s4985_s1 + $0x398] sm:$0xff]  }
  0x34   :  { %3358 = vmatprep.subr.bf16.mxu1 %v3695_v49  ;;  %2293 = vmatprep.mubr.bf16.mxu0 %v104_v16  ;;  %v3747_v49 = vld [vmem:[%s4985_s1 + $0x2f0] sm:$0xff]   ;;  %v3766_v16 = vld [vmem:[%s4985_s1 + $0x358] sm:$0xff]   ;;  %v3770_v20 = vld [vmem:[%s4985_s1 + $0x360] sm:$0xff]  }
  0x35   :  { %2334 = vmatprep.mubr.bf16.mxu1 %v106_v17  ;;  %v3767_v17 = vld [vmem:[%s4985_s1 + $0x3d8] sm:$0xff]   ;;  %v3772_v22 = vld [vmem:[%s4985_s1 + $0x320] sm:$0xff]  }
  0x36   :  { %3337 = vmatpush3.bf16.msra.mxu0 %v3696_v50  ;;  %v3748_v50 = vld [vmem:[%s4985_s1 + $0x230] sm:$0xff]  }
  0x37   :  { %3359 = vmatpush3.bf16.msra.mxu1 %v3697_v51  ;;  %3338 = vmatprep.subr.bf16.mxu0 %v3698_v52  ;;  %v3749_v51 = vld [vmem:[%s4985_s1 + $0x2b0] sm:$0xff]   ;;  %v3750_v52 = vld [vmem:[%s4985_s1 + $0x278] sm:$0xff]  }
  0x38   :  { %3360 = vmatprep.subr.bf16.mxu1 %v3699_v53  ;;  %v3751_v53 = vld [vmem:[%s4985_s1 + $0x2f8] sm:$0xff]  }
  0x3a   :  { %3339 = vmatpush3.bf16.msra.mxu0 %v3700_v54  ;;  %v3752_v54 = vld [vmem:[%s4985_s1 + $0x238] sm:$0xff]  }
  0x3b   :  { %3361 = vmatpush3.bf16.msra.mxu1 %v3701_v55  ;;  %3340 = vmatprep.subr.bf16.mxu0 %v3702_v56  ;;  %v3753_v55 = vld [vmem:[%s4985_s1 + $0x2b8] sm:$0xff]   ;;  %v44_v56 = vld [vmem:[%s4984_s0 + $0x48] sm:$0xff] }
  0x3c   :  { %3362 = vmatprep.subr.bf16.mxu1 %v3703_v57  ;;  %v76_v57 = vld [vmem:[%s4984_s0 + $0x148] sm:$0xff] }
  0x3e   :  { %3341 = vmatpush3.bf16.msra.mxu0 %v3704_v58  ;;  %v108_v58 = vpack.c.bf16 %v76_v57, %v44_v56  ;;  %v3794_v56 = vld [vmem:[%s4985_s1 + $0x450] sm:$0xff]  }
  0x3f   :  { %3363 = vmatpush3.bf16.msra.mxu1 %v3705_v59  ;;  %3342 = vmatprep.subr.bf16.mxu0 %v3706_v60  ;;  %v46_v59 = vld [vmem:[%s4984_s0 + $0x58] sm:$0xff]  ;;  %v3795_v57 = vld [vmem:[%s4985_s1 + $0x4d0] sm:$0xff]  }
  0x40   :  { %3364 = vmatprep.subr.bf16.mxu1 %v3707_v61  ;;  %v78_v60 = vld [vmem:[%s4984_s0 + $0x158] sm:$0xff]  ;;  %v43_v61 = vld [vmem:[%s4984_s0 + $0x40] sm:$0xff] }
  0x42   :  { %3343 = vmatpush3.bf16.msra.mxu0 %v3708_v62  ;;  %v110_v62 = vpack.c.bf16 %v78_v60, %v46_v59  ;;  %v3797_v59 = vld [vmem:[%s4985_s1 + $0x490] sm:$0xff]   ;;  %v3798_v60 = vld [vmem:[%s4985_s1 + $0x458] sm:$0xff]  }
  0x43   :  { %3365 = vmatpush3.bf16.msra.mxu1 %v3709_v63  ;;  %3344 = vmatprep.subr.bf16.mxu0 %v3710_v0  ;;  %v75_v63 = vld [vmem:[%s4984_s0 + $0x140] sm:$0xff]  ;;  %v45_v0 = vld [vmem:[%s4984_s0 + $0x50] sm:$0xff] }
  0x44   :  { %3366 = vmatprep.subr.bf16.mxu1 %v3711_v1  ;;  %v77_v1 = vld [vmem:[%s4984_s0 + $0x150] sm:$0xff] }
  0x46   :  { %3345 = vmatpush3.bf16.msra.mxu0 %v3712_v2  ;;  %v107_v2 = vpack.c.bf16 %v75_v63, %v43_v61  ;;  %v3799_v61 = vld [vmem:[%s4985_s1 + $0x4d8] sm:$0xff]  }
  0x47   :  { %3367 = vmatpush3.bf16.msra.mxu1 %v3713_v3  ;;  %3346 = vmatprep.subr.bf16.mxu0 %v3714_v4  ;;  %v109_v3 = vpack.c.bf16 %v77_v1, %v45_v0  ;;  %v3754_v4 = vld [vmem:[%s4985_s1 + $0x340] sm:$0xff]   ;;  %v3801_v63 = vld [vmem:[%s4985_s1 + $0x498] sm:$0xff]  }
  0x48   :  { %3368 = vmatprep.subr.bf16.mxu1 %v3715_v5  ;;  %v3755_v5 = vld [vmem:[%s4985_s1 + $0x3c0] sm:$0xff]  }
  0x49   :  { %v3802_v0 = vld [vmem:[%s4985_s1 + $0x460] sm:$0xff]  }
  0x4a   :  { %3347 = vmatpush3.bf16.msra.mxu0 %v3716_v6  ;;  %v3756_v6 = vld [vmem:[%s4985_s1 + $0x300] sm:$0xff]  }
  0x4b   :  { %3369 = vmatpush3.bf16.msra.mxu1 %v3717_v7  ;;  %3348 = vmatprep.subr.bf16.mxu0 %v3718_v8  ;;  %v3757_v7 = vld [vmem:[%s4985_s1 + $0x380] sm:$0xff]   ;;  %v3758_v8 = vld [vmem:[%s4985_s1 + $0x348] sm:$0xff]  }
  0x4c   :  { %3370 = vmatprep.subr.bf16.mxu1 %v3719_v9  ;;  %v3759_v9 = vld [vmem:[%s4985_s1 + $0x3c8] sm:$0xff]   ;;  %v3803_v1 = vld [vmem:[%s4985_s1 + $0x4e0] sm:$0xff]  }
  0x4e   :  { %3349 = vmatpush3.bf16.msra.mxu0 %v3720_v10  ;;  %v3760_v10 = vld [vmem:[%s4985_s1 + $0x308] sm:$0xff]  }
  0x4f   :  { %3371 = vmatpush3.bf16.msra.mxu1 %v3721_v11  ;;  %3378 = vmatprep.subr.bf16.mxu0 %v3722_v24  ;;  %v3761_v11 = vld [vmem:[%s4985_s1 + $0x388] sm:$0xff]  }
  0x50   :  { %3400 = vmatprep.subr.bf16.mxu1 %v3723_v25  ;;  %v3774_v24 = vld [vmem:[%s4985_s1 + $0x368] sm:$0xff]  }
  0x51   :  { %2294 = vmatmul.mubr.bf16.vlgmr.msra.gmra.mrb[4].mxu0 %v103_v21  ;;  %v3771_v21 = vld [vmem:[%s4985_s1 + $0x3e0] sm:$0xff]   ;;  %v3775_v25 = vld [vmem:[%s4985_s1 + $0x3e8] sm:$0xff]  }
  0x52   :  { %2335 = vmatmul.mubr.bf16.vlgmr.msra.gmra.mrb[4].mxu1 %v105_v23  ;;  %3379 = vmatpush3.bf16.msra.mxu0 %v3724_v26  ;;  %v3773_v23 = vld [vmem:[%s4985_s1 + $0x3a0] sm:$0xff]   ;;  %v3776_v26 = vld [vmem:[%s4985_s1 + $0x328] sm:$0xff]  }
  0x53   :  { %3401 = vmatpush3.bf16.msra.mxu1 %v3725_v27  ;;  %3380 = vmatprep.subr.bf16.mxu0 %v3726_v28  ;;  %v3777_v27 = vld [vmem:[%s4985_s1 + $0x3a8] sm:$0xff]   ;;  %v3778_v28 = vld [vmem:[%s4985_s1 + $0x370] sm:$0xff]  }
  0x54   :  { %3402 = vmatprep.subr.bf16.mxu1 %v3727_v29  ;;  %2375 = vmatprep.mubr.bf16.mxu0 %v108_v58  ;;  %v3779_v29 = vld [vmem:[%s4985_s1 + $0x3f0] sm:$0xff]  }
  0x55   :  { %2416 = vmatprep.mubr.bf16.mxu1 %v110_v62  ;;  %v3796_v58 = vld [vmem:[%s4985_s1 + $0x410] sm:$0xff]   ;;  %v3800_v62 = vld [vmem:[%s4985_s1 + $0x418] sm:$0xff]  }
  0x56   :  { %3381 = vmatpush3.bf16.msra.mxu0 %v3728_v30  ;;  %v3780_v30 = vld [vmem:[%s4985_s1 + $0x330] sm:$0xff]  }
  0x57   :  { %3403 = vmatpush3.bf16.msra.mxu1 %v3729_v31  ;;  %3382 = vmatprep.subr.bf16.mxu0 %v3730_v32  ;;  %v3781_v31 = vld [vmem:[%s4985_s1 + $0x3b0] sm:$0xff]   ;;  %v3782_v32 = vld [vmem:[%s4985_s1 + $0x378] sm:$0xff]  }
  0x58   :  { %3404 = vmatprep.subr.bf16.mxu1 %v3731_v33  ;;  %v3783_v33 = vld [vmem:[%s4985_s1 + $0x3f8] sm:$0xff]  }
  0x5a   :  { %3383 = vmatpush3.bf16.msra.mxu0 %v3732_v34  ;;  %v3784_v34 = vld [vmem:[%s4985_s1 + $0x338] sm:$0xff]  }
  0x5b   :  { %3405 = vmatpush3.bf16.msra.mxu1 %v3733_v35  ;;  %3384 = vmatprep.subr.bf16.mxu0 %v3734_v36  ;;  %v3785_v35 = vld [vmem:[%s4985_s1 + $0x3b8] sm:$0xff]   ;;  %v48_v36 = vld [vmem:[%s4984_s0 + $0x68] sm:$0xff] }
  0x5c   :  { %3406 = vmatprep.subr.bf16.mxu1 %v3735_v37  ;;  %v80_v37 = vld [vmem:[%s4984_s0 + $0x168] sm:$0xff] }
  0x5e   :  { %3385 = vmatpush3.bf16.msra.mxu0 %v3736_v38  ;;  %v50_v38 = vld [vmem:[%s4984_s0 + $0x78] sm:$0xff] }
  0x5f   :  { %3407 = vmatpush3.bf16.msra.mxu1 %v3737_v39  ;;  %3386 = vmatprep.subr.bf16.mxu0 %v3738_v40  ;;  %v112_v39 = vpack.c.bf16 %v80_v37, %v48_v36  ;;  %v82_v40 = vld [vmem:[%s4984_s0 + $0x178] sm:$0xff]  ;;  %v3826_v36 = vld [vmem:[%s4985_s1 + $0x550] sm:$0xff]  }
  0x60   :  { %3408 = vmatprep.subr.bf16.mxu1 %v3739_v41  ;;  %v47_v41 = vld [vmem:[%s4984_s0 + $0x60] sm:$0xff]  ;;  %v3827_v37 = vld [vmem:[%s4985_s1 + $0x5d0] sm:$0xff]  }
  0x62   :  { %3387 = vmatpush3.bf16.msra.mxu0 %v3740_v42  ;;  %v79_v42 = vld [vmem:[%s4984_s0 + $0x160] sm:$0xff] }
  0x63   :  { %3409 = vmatpush3.bf16.msra.mxu1 %v3741_v43  ;;  %3388 = vmatprep.subr.bf16.mxu0 %v3742_v44  ;;  %v114_v43 = vpack.c.bf16 %v82_v40, %v50_v38  ;;  %v111_v44 = vpack.c.bf16 %v79_v42, %v47_v41  ;;  %v3828_v38 = vld [vmem:[%s4985_s1 + $0x510] sm:$0xff]   ;;  %v3830_v40 = vld [vmem:[%s4985_s1 + $0x558] sm:$0xff]  }
  0x64   :  { %3410 = vmatprep.subr.bf16.mxu1 %v3743_v45  ;;  %v49_v45 = vld [vmem:[%s4984_s0 + $0x70] sm:$0xff]  ;;  %v3831_v41 = vld [vmem:[%s4985_s1 + $0x5d8] sm:$0xff]  }
  0x65   :  { %v3832_v42 = vld [vmem:[%s4985_s1 + $0x518] sm:$0xff]  }
  0x66   :  { %3389 = vmatpush3.bf16.msra.mxu0 %v3744_v46  ;;  %v81_v46 = vld [vmem:[%s4984_s0 + $0x170] sm:$0xff] }
  0x67   :  { %3411 = vmatpush3.bf16.msra.mxu1 %v3745_v47  ;;  %3390 = vmatprep.subr.bf16.mxu0 %v3746_v48  ;;  %v113_v47 = vpack.c.bf16 %v81_v46, %v49_v45  ;;  %v3786_v48 = vld [vmem:[%s4985_s1 + $0x440] sm:$0xff]  }
  0x68   :  { %3412 = vmatprep.subr.bf16.mxu1 %v3747_v49  ;;  %v3787_v49 = vld [vmem:[%s4985_s1 + $0x4c0] sm:$0xff]  }
  0x69   :  { %v3835_v45 = vld [vmem:[%s4985_s1 + $0x5e0] sm:$0xff]  }
  0x6a   :  { %3391 = vmatpush3.bf16.msra.mxu0 %v3748_v50  ;;  %v3788_v50 = vld [vmem:[%s4985_s1 + $0x400] sm:$0xff]  }
  0x6b   :  { %3413 = vmatpush3.bf16.msra.mxu1 %v3749_v51  ;;  %3392 = vmatprep.subr.bf16.mxu0 %v3750_v52  ;;  %v3789_v51 = vld [vmem:[%s4985_s1 + $0x480] sm:$0xff]   ;;  %v3790_v52 = vld [vmem:[%s4985_s1 + $0x448] sm:$0xff]  }
  0x6c   :  { %3414 = vmatprep.subr.bf16.mxu1 %v3751_v53  ;;  %v3791_v53 = vld [vmem:[%s4985_s1 + $0x4c8] sm:$0xff]   ;;  %v3836_v46 = vld [vmem:[%s4985_s1 + $0x520] sm:$0xff]  }
  0x6e   :  { %3393 = vmatpush3.bf16.msra.mxu0 %v3752_v54  ;;  %v3792_v54 = vld [vmem:[%s4985_s1 + $0x408] sm:$0xff]  }
  0x6f   :  { %3415 = vmatpush3.bf16.msra.mxu1 %v3753_v55  ;;  %3422 = vmatprep.subr.bf16.mxu0 %v3754_v4  ;;  %v3793_v55 = vld [vmem:[%s4985_s1 + $0x488] sm:$0xff]  }
  0x70   :  { %3444 = vmatprep.subr.bf16.mxu1 %v3755_v5  ;;  %v3806_v4 = vld [vmem:[%s4985_s1 + $0x468] sm:$0xff]  }
  0x71   :  { %2376 = vmatmul.mubr.bf16.vlgmr.msra.gmra.mrb[8].mxu0 %v107_v2  ;;  %v3804_v2 = vld [vmem:[%s4985_s1 + $0x420] sm:$0xff]   ;;  %v3807_v5 = vld [vmem:[%s4985_s1 + $0x4e8] sm:$0xff]  }
  0x72   :  { %2417 = vmatmul.mubr.bf16.vlgmr.msra.gmra.mrb[8].mxu1 %v109_v3  ;;  %3423 = vmatpush3.bf16.msra.mxu0 %v3756_v6  ;;  %v3805_v3 = vld [vmem:[%s4985_s1 + $0x4a0] sm:$0xff]   ;;  %v3808_v6 = vld [vmem:[%s4985_s1 + $0x428] sm:$0xff]  }
  0x73   :  { %3445 = vmatpush3.bf16.msra.mxu1 %v3757_v7  ;;  %3424 = vmatprep.subr.bf16.mxu0 %v3758_v8  ;;  %v3809_v7 = vld [vmem:[%s4985_s1 + $0x4a8] sm:$0xff]   ;;  %v3810_v8 = vld [vmem:[%s4985_s1 + $0x470] sm:$0xff]  }
  0x74   :  { %3446 = vmatprep.subr.bf16.mxu1 %v3759_v9  ;;  %2457 = vmatprep.mubr.bf16.mxu0 %v112_v39  ;;  %v3811_v9 = vld [vmem:[%s4985_s1 + $0x4f0] sm:$0xff]  }
  0x75   :  { %2498 = vmatprep.mubr.bf16.mxu1 %v114_v43  ;;  %v3829_v39 = vld [vmem:[%s4985_s1 + $0x590] sm:$0xff]   ;;  %v3833_v43 = vld [vmem:[%s4985_s1 + $0x598] sm:$0xff]  }
  0x76   :  { %3425 = vmatpush3.bf16.msra.mxu0 %v3760_v10  ;;  %v3812_v10 = vld [vmem:[%s4985_s1 + $0x430] sm:$0xff]  }
  0x77   :  { %3447 = vmatpush3.bf16.msra.mxu1 %v3761_v11  ;;  %3426 = vmatprep.subr.bf16.mxu0 %v3762_v12  ;;  %v3813_v11 = vld [vmem:[%s4985_s1 + $0x4b0] sm:$0xff]   ;;  %v3814_v12 = vld [vmem:[%s4985_s1 + $0x478] sm:$0xff]  }
  0x78   :  { %3448 = vmatprep.subr.bf16.mxu1 %v3763_v13  ;;  %v3815_v13 = vld [vmem:[%s4985_s1 + $0x4f8] sm:$0xff]  }
  0x7a   :  { %3427 = vmatpush3.bf16.msra.mxu0 %v3764_v14  ;;  %v3816_v14 = vld [vmem:[%s4985_s1 + $0x438] sm:$0xff]  }
  0x7b   :  { %3449 = vmatpush3.bf16.msra.mxu1 %v3765_v15  ;;  %3428 = vmatprep.subr.bf16.mxu0 %v3766_v16  ;;  %v3817_v15 = vld [vmem:[%s4985_s1 + $0x4b8] sm:$0xff]   ;;  %v52_v16 = vld [vmem:[%s4984_s0 + $0x88] sm:$0xff] }
  0x7c   :  { %3450 = vmatprep.subr.bf16.mxu1 %v3767_v17  ;;  %v84_v17 = vld [vmem:[%s4984_s0 + $0x188] sm:$0xff] }
  0x7e   :  { %3429 = vmatpush3.bf16.msra.mxu0 %v3768_v18  ;;  %v54_v18 = vld [vmem:[%s4984_s0 + $0x98] sm:$0xff] }
  0x7f   :  { %3451 = vmatpush3.bf16.msra.mxu1 %v3769_v19  ;;  %3430 = vmatprep.subr.bf16.mxu0 %v3770_v20  ;;  %v86_v19 = vld [vmem:[%s4984_s0 + $0x198] sm:$0xff]  ;;  %v116_v20 = vpack.c.bf16 %v84_v17, %v52_v16  ;;  %v3858_v16 = vld [vmem:[%s4985_s1 + $0x650] sm:$0xff]  }
  0x80   :  { %3452 = vmatprep.subr.bf16.mxu1 %v3771_v21  ;;  %v118_v21 = vpack.c.bf16 %v86_v19, %v54_v18  ;;  %v3859_v17 = vld [vmem:[%s4985_s1 + $0x6d0] sm:$0xff]  }
  0x81   :  { %v3860_v18 = vld [vmem:[%s4985_s1 + $0x610] sm:$0xff]  }
  0x82   :  { %3431 = vmatpush3.bf16.msra.mxu0 %v3772_v22  ;;  %v51_v22 = vld [vmem:[%s4984_s0 + $0x80] sm:$0xff]  ;;  %v3861_v19 = vld [vmem:[%s4985_s1 + $0x690] sm:$0xff]  }
  0x83   :  { %3453 = vmatpush3.bf16.msra.mxu1 %v3773_v23  ;;  %3432 = vmatprep.subr.bf16.mxu0 %v3774_v24  ;;  %v83_v23 = vld [vmem:[%s4984_s0 + $0x180] sm:$0xff]  ;;  %v53_v24 = vld [vmem:[%s4984_s0 + $0x90] sm:$0xff] }
  0x84   :  { %3454 = vmatprep.subr.bf16.mxu1 %v3775_v25  ;;  %v115_v25 = vpack.c.bf16 %v83_v23, %v51_v22  ;;  %v3864_v22 = vld [vmem:[%s4985_s1 + $0x618] sm:$0xff]  }
  0x85   :  { %v3865_v23 = vld [vmem:[%s4985_s1 + $0x698] sm:$0xff]  }
  0x86   :  { %3433 = vmatpush3.bf16.msra.mxu0 %v3776_v26  ;;  %v85_v26 = vld [vmem:[%s4984_s0 + $0x190] sm:$0xff] }
  0x87   :  { %3455 = vmatpush3.bf16.msra.mxu1 %v3777_v27  ;;  %3434 = vmatprep.subr.bf16.mxu0 %v3778_v28  ;;  %v117_v27 = vpack.c.bf16 %v85_v26, %v53_v24  ;;  %v3818_v28 = vld [vmem:[%s4985_s1 + $0x540] sm:$0xff]  }
  0x88   :  { %3456 = vmatprep.subr.bf16.mxu1 %v3779_v29  ;;  %v3819_v29 = vld [vmem:[%s4985_s1 + $0x5c0] sm:$0xff]  }
  0x89   :  { %v3866_v24 = vld [vmem:[%s4985_s1 + $0x660] sm:$0xff]  }
  0x8a   :  { %3435 = vmatpush3.bf16.msra.mxu0 %v3780_v30  ;;  %v3820_v30 = vld [vmem:[%s4985_s1 + $0x500] sm:$0xff]  }
  0x8b   :  { %3457 = vmatpush3.bf16.msra.mxu1 %v3781_v31  ;;  %3436 = vmatprep.subr.bf16.mxu0 %v3782_v32  ;;  %v3821_v31 = vld [vmem:[%s4985_s1 + $0x580] sm:$0xff]   ;;  %v3822_v32 = vld [vmem:[%s4985_s1 + $0x548] sm:$0xff]  }
  0x8c   :  { %3458 = vmatprep.subr.bf16.mxu1 %v3783_v33  ;;  %v3823_v33 = vld [vmem:[%s4985_s1 + $0x5c8] sm:$0xff]   ;;  %v3868_v26 = vld [vmem:[%s4985_s1 + $0x620] sm:$0xff]  }
  0x8e   :  { %3437 = vmatpush3.bf16.msra.mxu0 %v3784_v34  ;;  %v3824_v34 = vld [vmem:[%s4985_s1 + $0x508] sm:$0xff]  }
  0x8f   :  { %3459 = vmatpush3.bf16.msra.mxu1 %v3785_v35  ;;  %3466 = vmatprep.subr.bf16.mxu0 %v3786_v48  ;;  %v3825_v35 = vld [vmem:[%s4985_s1 + $0x588] sm:$0xff]  }
  0x90   :  { %3488 = vmatprep.subr.bf16.mxu1 %v3787_v49  ;;  %v3838_v48 = vld [vmem:[%s4985_s1 + $0x568] sm:$0xff]  }
  0x91   :  { %2458 = vmatmul.mubr.bf16.vlgmr.msra.gmra.mrb[12].mxu0 %v111_v44  ;;  %v3834_v44 = vld [vmem:[%s4985_s1 + $0x560] sm:$0xff]   ;;  %v3839_v49 = vld [vmem:[%s4985_s1 + $0x5e8] sm:$0xff]  }
  0x92   :  { %2499 = vmatmul.mubr.bf16.vlgmr.msra.gmra.mrb[12].mxu1 %v113_v47  ;;  %3467 = vmatpush3.bf16.msra.mxu0 %v3788_v50  ;;  %v3837_v47 = vld [vmem:[%s4985_s1 + $0x5a0] sm:$0xff]   ;;  %v3840_v50 = vld [vmem:[%s4985_s1 + $0x528] sm:$0xff]  }
  0x93   :  { %3489 = vmatpush3.bf16.msra.mxu1 %v3789_v51  ;;  %3468 = vmatprep.subr.bf16.mxu0 %v3790_v52  ;;  %v3841_v51 = vld [vmem:[%s4985_s1 + $0x5a8] sm:$0xff]   ;;  %v3842_v52 = vld [vmem:[%s4985_s1 + $0x570] sm:$0xff]  }
  0x94   :  { %3490 = vmatprep.subr.bf16.mxu1 %v3791_v53  ;;  %2539 = vmatprep.mubr.bf16.mxu0 %v116_v20  ;;  %v3843_v53 = vld [vmem:[%s4985_s1 + $0x5f0] sm:$0xff]   ;;  %v3862_v20 = vld [vmem:[%s4985_s1 + $0x658] sm:$0xff]  }
  0x95   :  { %2580 = vmatprep.mubr.bf16.mxu1 %v118_v21  ;;  %v3863_v21 = vld [vmem:[%s4985_s1 + $0x6d8] sm:$0xff]  }
  0x96   :  { %3469 = vmatpush3.bf16.msra.mxu0 %v3792_v54  ;;  %v3844_v54 = vld [vmem:[%s4985_s1 + $0x530] sm:$0xff]  }
  0x97   :  { %3491 = vmatpush3.bf16.msra.mxu1 %v3793_v55  ;;  %3470 = vmatprep.subr.bf16.mxu0 %v3794_v56  ;;  %v3845_v55 = vld [vmem:[%s4985_s1 + $0x5b0] sm:$0xff]   ;;  %v3846_v56 = vld [vmem:[%s4985_s1 + $0x578] sm:$0xff]  }
  0x98   :  { %3492 = vmatprep.subr.bf16.mxu1 %v3795_v57  ;;  %v3847_v57 = vld [vmem:[%s4985_s1 + $0x5f8] sm:$0xff]  }
  0x9a   :  { %3471 = vmatpush3.bf16.msra.mxu0 %v3796_v58  ;;  %v3848_v58 = vld [vmem:[%s4985_s1 + $0x538] sm:$0xff]  }
  0x9b   :  { %3493 = vmatpush3.bf16.msra.mxu1 %v3797_v59  ;;  %3472 = vmatprep.subr.bf16.mxu0 %v3798_v60  ;;  %v3849_v59 = vld [vmem:[%s4985_s1 + $0x5b8] sm:$0xff]   ;;  %v56_v60 = vld [vmem:[%s4984_s0 + $0xa8] sm:$0xff] }
  0x9c   :  { %3494 = vmatprep.subr.bf16.mxu1 %v3799_v61  ;;  %v88_v61 = vld [vmem:[%s4984_s0 + $0x1a8] sm:$0xff] }
  0x9e   :  { %3473 = vmatpush3.bf16.msra.mxu0 %v3800_v62  ;;  %v120_v62 = vpack.c.bf16 %v88_v61, %v56_v60  ;;  %v3888_v60 = vld [vmem:[%s4985_s1 + $0x708] sm:$0xff]  }
  0x9f   :  { %3495 = vmatpush3.bf16.msra.mxu1 %v3801_v63  ;;  %3474 = vmatprep.subr.bf16.mxu0 %v3802_v0  ;;  %v58_v63 = vld [vmem:[%s4984_s0 + $0xb8] sm:$0xff] }
  0xa0   :  { %3496 = vmatprep.subr.bf16.mxu1 %v3803_v1  ;;  %v90_v0 = vld [vmem:[%s4984_s0 + $0x1b8] sm:$0xff]  ;;  %v55_v1 = vld [vmem:[%s4984_s0 + $0xa0] sm:$0xff] }
  0xa2   :  { %3475 = vmatpush3.bf16.msra.mxu0 %v3804_v2  ;;  %v122_v2 = vpack.c.bf16 %v90_v0, %v58_v63 }
  0xa3   :  { %3497 = vmatpush3.bf16.msra.mxu1 %v3805_v3  ;;  %3476 = vmatprep.subr.bf16.mxu0 %v3806_v4  ;;  %v87_v3 = vld [vmem:[%s4984_s0 + $0x1a0] sm:$0xff]  ;;  %v57_v4 = vld [vmem:[%s4984_s0 + $0xb0] sm:$0xff] }
  0xa4   :  { %3498 = vmatprep.subr.bf16.mxu1 %v3807_v5  ;;  %v89_v5 = vld [vmem:[%s4984_s0 + $0x1b0] sm:$0xff] }
  0xa6   :  { %3477 = vmatpush3.bf16.msra.mxu0 %v3808_v6  ;;  %v119_v6 = vpack.c.bf16 %v87_v3, %v55_v1  ;;  %v3890_v1 = vld [vmem:[%s4985_s1 + $0x750] sm:$0xff]  }
  0xa7   :  { %3499 = vmatpush3.bf16.msra.mxu1 %v3809_v7  ;;  %3478 = vmatprep.subr.bf16.mxu0 %v3810_v8  ;;  %v121_v7 = vpack.c.bf16 %v89_v5, %v57_v4  ;;  %v3850_v8 = vld [vmem:[%s4985_s1 + $0x640] sm:$0xff]   ;;  %v3891_v4 = vld [vmem:[%s4985_s1 + $0x7d0] sm:$0xff]  }
  0xa8   :  { %3500 = vmatprep.subr.bf16.mxu1 %v3811_v9  ;;  %v3851_v9 = vld [vmem:[%s4985_s1 + $0x6c0] sm:$0xff]  }
  0xaa   :  { %3479 = vmatpush3.bf16.msra.mxu0 %v3812_v10  ;;  %v3852_v10 = vld [vmem:[%s4985_s1 + $0x600] sm:$0xff]  }
  0xab   :  { %3501 = vmatpush3.bf16.msra.mxu1 %v3813_v11  ;;  %3480 = vmatprep.subr.bf16.mxu0 %v3814_v12  ;;  %v3853_v11 = vld [vmem:[%s4985_s1 + $0x680] sm:$0xff]   ;;  %v3854_v12 = vld [vmem:[%s4985_s1 + $0x648] sm:$0xff]  }
  0xac   :  { %3502 = vmatprep.subr.bf16.mxu1 %v3815_v13  ;;  %v3855_v13 = vld [vmem:[%s4985_s1 + $0x6c8] sm:$0xff]  }
  0xae   :  { %3481 = vmatpush3.bf16.msra.mxu0 %v3816_v14  ;;  %v3856_v14 = vld [vmem:[%s4985_s1 + $0x608] sm:$0xff]  }
  0xaf   :  { %3503 = vmatpush3.bf16.msra.mxu1 %v3817_v15  ;;  %3510 = vmatprep.subr.bf16.mxu0 %v3818_v28  ;;  %v3857_v15 = vld [vmem:[%s4985_s1 + $0x688] sm:$0xff]  }
  0xb0   :  { %3532 = vmatprep.subr.bf16.mxu1 %v3819_v29  ;;  %v3870_v28 = vld [vmem:[%s4985_s1 + $0x668] sm:$0xff]  }
  0xb1   :  { %2540 = vmatmul.mubr.bf16.vlgmr.msra.gmra.mrb[16].mxu0 %v115_v25  ;;  %v3867_v25 = vld [vmem:[%s4985_s1 + $0x6e0] sm:$0xff]   ;;  %v3871_v29 = vld [vmem:[%s4985_s1 + $0x6e8] sm:$0xff]  }
  0xb2   :  { %2581 = vmatmul.mubr.bf16.vlgmr.msra.gmra.mrb[16].mxu1 %v117_v27  ;;  %3511 = vmatpush3.bf16.msra.mxu0 %v3820_v30  ;;  %v3869_v27 = vld [vmem:[%s4985_s1 + $0x6a0] sm:$0xff]   ;;  %v3872_v30 = vld [vmem:[%s4985_s1 + $0x628] sm:$0xff]  }
  0xb3   :  { %3533 = vmatpush3.bf16.msra.mxu1 %v3821_v31  ;;  %3512 = vmatprep.subr.bf16.mxu0 %v3822_v32  ;;  %v3873_v31 = vld [vmem:[%s4985_s1 + $0x6a8] sm:$0xff]   ;;  %v3874_v32 = vld [vmem:[%s4985_s1 + $0x670] sm:$0xff]  }
  0xb4   :  { %3534 = vmatprep.subr.bf16.mxu1 %v3823_v33  ;;  %2621 = vmatprep.mubr.bf16.mxu0 %v120_v62  ;;  %v3875_v33 = vld [vmem:[%s4985_s1 + $0x6f0] sm:$0xff]   ;;  %v3889_v62 = vld [vmem:[%s4985_s1 + $0x788] sm:$0xff]  }
  0xb5   :  { %2662 = vmatprep.mubr.bf16.mxu1 %v122_v2 }
  0xb6   :  { %3513 = vmatpush3.bf16.msra.mxu0 %v3824_v34  ;;  %v3876_v34 = vld [vmem:[%s4985_s1 + $0x630] sm:$0xff]  }
  0xb7   :  { %3535 = vmatpush3.bf16.msra.mxu1 %v3825_v35  ;;  %3514 = vmatprep.subr.bf16.mxu0 %v3826_v36  ;;  %v3877_v35 = vld [vmem:[%s4985_s1 + $0x6b0] sm:$0xff]   ;;  %v3878_v36 = vld [vmem:[%s4985_s1 + $0x678] sm:$0xff]  }
  0xb8   :  { %3536 = vmatprep.subr.bf16.mxu1 %v3827_v37  ;;  %v3879_v37 = vld [vmem:[%s4985_s1 + $0x6f8] sm:$0xff]  }
  0xba   :  { %3515 = vmatpush3.bf16.msra.mxu0 %v3828_v38  ;;  %v3880_v38 = vld [vmem:[%s4985_s1 + $0x638] sm:$0xff]  }
  0xbb   :  { %3537 = vmatpush3.bf16.msra.mxu1 %v3829_v39  ;;  %3516 = vmatprep.subr.bf16.mxu0 %v3830_v40  ;;  %v3881_v39 = vld [vmem:[%s4985_s1 + $0x6b8] sm:$0xff]   ;;  %v60_v40 = vld [vmem:[%s4984_s0 + $0xc8] sm:$0xff] }
  0xbc   :  { %3538 = vmatprep.subr.bf16.mxu1 %v3831_v41  ;;  %v92_v41 = vld [vmem:[%s4984_s0 + $0x1c8] sm:$0xff] }
  0xbe   :  { %3517 = vmatpush3.bf16.msra.mxu0 %v3832_v42  ;;  %v62_v42 = vld [vmem:[%s4984_s0 + $0xd8] sm:$0xff] }
  0xbf   :  { %3539 = vmatpush3.bf16.msra.mxu1 %v3833_v43  ;;  %3518 = vmatprep.subr.bf16.mxu0 %v3834_v44  ;;  %v124_v43 = vpack.c.bf16 %v92_v41, %v60_v40  ;;  %v94_v44 = vld [vmem:[%s4984_s0 + $0x1d8] sm:$0xff]  ;;  %v63_v40 = vld [vmem:[%s4984_s0 + $0xe0] sm:$0xff] }
  0xc0   :  { %3540 = vmatprep.subr.bf16.mxu1 %v3835_v45  ;;  %v59_v45 = vld [vmem:[%s4984_s0 + $0xc0] sm:$0xff] }
  0xc1   :  { %v95_v41 = vld [vmem:[%s4984_s0 + $0x1e0] sm:$0xff] }
  0xc2   :  { %3519 = vmatpush3.bf16.msra.mxu0 %v3836_v46  ;;  %v91_v46 = vld [vmem:[%s4984_s0 + $0x1c0] sm:$0xff] }
  0xc3   :  { %3541 = vmatpush3.bf16.msra.mxu1 %v3837_v47  ;;  %3520 = vmatprep.subr.bf16.mxu0 %v3838_v48  ;;  %v126_v47 = vpack.c.bf16 %v94_v44, %v62_v42  ;;  %v123_v48 = vpack.c.bf16 %v91_v46, %v59_v45  ;;  %v65_v42 = vld [vmem:[%s4984_s0 + $0xf0] sm:$0xff] }
  0xc4   :  { %3542 = vmatprep.subr.bf16.mxu1 %v3839_v49  ;;  %v61_v49 = vld [vmem:[%s4984_s0 + $0xd0] sm:$0xff] }
  0xc5   :  { %v97_v44 = vld [vmem:[%s4984_s0 + $0x1f0] sm:$0xff] }
  0xc6   :  { %3521 = vmatpush3.bf16.msra.mxu0 %v3840_v50  ;;  %v93_v50 = vld [vmem:[%s4984_s0 + $0x1d0] sm:$0xff]  ;;  %v129_v45 = vpack.c.bf16 %v97_v44, %v65_v42 }
  0xc7   :  { %3543 = vmatpush3.bf16.msra.mxu1 %v3841_v51  ;;  %3522 = vmatprep.subr.bf16.mxu0 %v3842_v52  ;;  %v125_v51 = vpack.c.bf16 %v93_v50, %v61_v49  ;;  %v3882_v52 = vld [vmem:[%s4985_s1 + $0x740] sm:$0xff]  }
  0xc8   :  { %3544 = vmatprep.subr.bf16.mxu1 %v3843_v53  ;;  %v3883_v53 = vld [vmem:[%s4985_s1 + $0x7c0] sm:$0xff]  }
  0xca   :  { %3523 = vmatpush3.bf16.msra.mxu0 %v3844_v54  ;;  %v3884_v54 = vld [vmem:[%s4985_s1 + $0x700] sm:$0xff]  }
  0xcb   :  { %3545 = vmatpush3.bf16.msra.mxu1 %v3845_v55  ;;  %3524 = vmatprep.subr.bf16.mxu0 %v3846_v56  ;;  %v3885_v55 = vld [vmem:[%s4985_s1 + $0x780] sm:$0xff]   ;;  %v3886_v56 = vld [vmem:[%s4985_s1 + $0x748] sm:$0xff]  }
  0xcc   :  { %3546 = vmatprep.subr.bf16.mxu1 %v3847_v57 }
  0xce   :  { %3525 = vmatpush3.bf16.msra.mxu0 %v3848_v58  ;;  %v3887_v58 = vld [vmem:[%s4985_s1 + $0x7c8] sm:$0xff]  }
  0xcf   :  { %3547 = vmatpush3.bf16.msra.mxu1 %v3849_v59  ;;  %3554 = vmatprep.subr.bf16.mxu0 %v3850_v8 }
  0xd0   :  { %3576 = vmatprep.subr.bf16.mxu1 %v3851_v9  ;;  %v3893_v9 = vld [vmem:[%s4985_s1 + $0x790] sm:$0xff]  }
  0xd1   :  { %2622 = vmatmul.mubr.bf16.vlgmr.msra.gmra.mrb[20].mxu0 %v119_v6  ;;  %v3892_v6 = vld [vmem:[%s4985_s1 + $0x710] sm:$0xff]  }
  0xd2   :  { %2663 = vmatmul.mubr.bf16.vlgmr.msra.gmra.mrb[20].mxu1 %v121_v7  ;;  %3555 = vmatpush3.bf16.msra.mxu0 %v3852_v10 }
  0xd3   :  { %3577 = vmatpush3.bf16.msra.mxu1 %v3853_v11  ;;  %3556 = vmatprep.subr.bf16.mxu0 %v3854_v12  ;;  %v3894_v12 = vld [vmem:[%s4985_s1 + $0x758] sm:$0xff]  }
  0xd4   :  { %3578 = vmatprep.subr.bf16.mxu1 %v3855_v13  ;;  %2703 = vmatprep.mubr.bf16.mxu0 %v124_v43  ;;  %v127_v43 = vpack.c.bf16 %v95_v41, %v63_v40 }
  0xd5   :  { %2744 = vmatprep.mubr.bf16.mxu1 %v126_v47 }
  0xd6   :  { %3557 = vmatpush3.bf16.msra.mxu0 %v3856_v14  ;;  %v3895_v14 = vld [vmem:[%s4985_s1 + $0x7d8] sm:$0xff]  }
  0xd7   :  { %3579 = vmatpush3.bf16.msra.mxu1 %v3857_v15  ;;  %3558 = vmatprep.subr.bf16.mxu0 %v3858_v16  ;;  %v3896_v15 = vld [vmem:[%s4985_s1 + $0x718] sm:$0xff]  }
  0xd8   :  { %3580 = vmatprep.subr.bf16.mxu1 %v3859_v17  ;;  %v3897_v17 = vld [vmem:[%s4985_s1 + $0x798] sm:$0xff]  }
  0xda   :  { %3559 = vmatpush3.bf16.msra.mxu0 %v3860_v18  ;;  %v3898_v18 = vld [vmem:[%s4985_s1 + $0x760] sm:$0xff]  }
  0xdb   :  { %3581 = vmatpush3.bf16.msra.mxu1 %v3861_v19  ;;  %3560 = vmatprep.subr.bf16.mxu0 %v3862_v20  ;;  %v3899_v19 = vld [vmem:[%s4985_s1 + $0x7e0] sm:$0xff]  }
  0xdc   :  { %3582 = vmatprep.subr.bf16.mxu1 %v3863_v21  ;;  %v3900_v20 = vld [vmem:[%s4985_s1 + $0x720] sm:$0xff]  }
  0xdd   :  { %v3901_v21 = vld [vmem:[%s4985_s1 + $0x7a0] sm:$0xff]  }
  0xde   :  { %3561 = vmatpush3.bf16.msra.mxu0 %v3864_v22  ;;  %v3902_v22 = vld [vmem:[%s4985_s1 + $0x768] sm:$0xff]  }
  0xdf   :  { %3583 = vmatpush3.bf16.msra.mxu1 %v3865_v23  ;;  %3562 = vmatprep.subr.bf16.mxu0 %v3866_v24  ;;  %v3903_v23 = vld [vmem:[%s4985_s1 + $0x7e8] sm:$0xff]  }
  0xe0   :  { %3584 = vmatprep.subr.bf16.mxu1 %v3867_v25  ;;  %v3904_v24 = vld [vmem:[%s4985_s1 + $0x728] sm:$0xff]  }
  0xe1   :  { %v3905_v25 = vld [vmem:[%s4985_s1 + $0x7a8] sm:$0xff]  }
  0xe2   :  { %3563 = vmatpush3.bf16.msra.mxu0 %v3868_v26  ;;  %v3906_v26 = vld [vmem:[%s4985_s1 + $0x770] sm:$0xff]  }
  0xe3   :  { %3585 = vmatpush3.bf16.msra.mxu1 %v3869_v27  ;;  %3564 = vmatprep.subr.bf16.mxu0 %v3870_v28  ;;  %v3907_v27 = vld [vmem:[%s4985_s1 + $0x7f0] sm:$0xff]  }
  0xe4   :  { %3586 = vmatprep.subr.bf16.mxu1 %v3871_v29  ;;  %v3908_v28 = vld [vmem:[%s4985_s1 + $0x730] sm:$0xff]  }
  0xe5   :  { %v3909_v29 = vld [vmem:[%s4985_s1 + $0x7b0] sm:$0xff]  }
  0xe6   :  { %3565 = vmatpush3.bf16.msra.mxu0 %v3872_v30  ;;  %v3910_v30 = vld [vmem:[%s4985_s1 + $0x778] sm:$0xff]  }
  0xe7   :  { %3587 = vmatpush3.bf16.msra.mxu1 %v3873_v31  ;;  %3566 = vmatprep.subr.bf16.mxu0 %v3874_v32  ;;  %v3911_v31 = vld [vmem:[%s4985_s1 + $0x7f8] sm:$0xff]  }
  0xe8   :  { %3588 = vmatprep.subr.bf16.mxu1 %v3875_v33  ;;  %v3912_v32 = vld [vmem:[%s4985_s1 + $0x738] sm:$0xff]  }
  0xe9   :  { %v3913_v33 = vld [vmem:[%s4985_s1 + $0x7b8] sm:$0xff]  }
  0xea   :  { %3567 = vmatpush3.bf16.msra.mxu0 %v3876_v34  ;;  %v64_v34 = vld [vmem:[%s4984_s0 + $0xe8] sm:$0xff] }
  0xeb   :  { %3589 = vmatpush3.bf16.msra.mxu1 %v3877_v35  ;;  %3568 = vmatprep.subr.bf16.mxu0 %v3878_v36  ;;  %v96_v35 = vld [vmem:[%s4984_s0 + $0x1e8] sm:$0xff]  ;;  %v66_v36 = vld [vmem:[%s4984_s0 + $0xf8] sm:$0xff] }
  0xec   :  { %3590 = vmatprep.subr.bf16.mxu1 %v3879_v37  ;;  %v98_v37 = vld [vmem:[%s4984_s0 + $0x1f8] sm:$0xff]  ;;  %s29_s0 = sld [smem:[#allocation2]] }
  0xee   :  { %3569 = vmatpush3.bf16.msra.mxu0 %v3880_v38  ;;  %v128_v38 = vpack.c.bf16 %v96_v35, %v64_v34  ;;  %v3959_v35 = vmov 1.0  }
  0xef   :  { %3591 = vmatpush3.bf16.msra.mxu1 %v3881_v39  ;;  %3598 = vmatprep.subr.bf16.mxu0 %v3882_v52  ;;  %v130_v39 = vpack.c.bf16 %v98_v37, %v66_v36 }
  0xf0   :  { %3620 = vmatprep.subr.bf16.mxu1 %v3883_v53 }
  0xf1   :  { %2704 = vmatmul.mubr.bf16.vlgmr.msra.gmra.mrb[24].mxu0 %v123_v48 }
  0xf2   :  { %2745 = vmatmul.mubr.bf16.vlgmr.msra.gmra.mrb[24].mxu1 %v125_v51  ;;  %3599 = vmatpush3.bf16.msra.mxu0 %v3884_v54 }
  0xf3   :  { %3621 = vmatpush3.bf16.msra.mxu1 %v3885_v55  ;;  %3600 = vmatprep.subr.bf16.mxu0 %v3886_v56 }
  0xf4   :  { %3622 = vmatprep.subr.bf16.mxu1 %v3887_v58  ;;  %2785 = vmatprep.mubr.bf16.mxu0 %v128_v38 }
  0xf5   :  { %2826 = vmatprep.mubr.bf16.mxu1 %v130_v39 }
  0xf6   :  { %3601 = vmatpush3.bf16.msra.mxu0 %v3888_v60 }
  0xf7   :  { %3623 = vmatpush3.bf16.msra.mxu1 %v3889_v62  ;;  %3602 = vmatprep.subr.bf16.mxu0 %v3890_v1 }
  0xf8   :  { %3624 = vmatprep.subr.bf16.mxu1 %v3891_v4 }
  0xfa   :  { %3603 = vmatpush3.bf16.msra.mxu0 %v3892_v6 }
  0xfb   :  { %3625 = vmatpush3.bf16.msra.mxu1 %v3893_v9  ;;  %3604 = vmatprep.subr.bf16.mxu0 %v3894_v12 }
  0xfc   :  { %3626 = vmatprep.subr.bf16.mxu1 %v3895_v14 }
  0xfe   :  { %3605 = vmatpush3.bf16.msra.mxu0 %v3896_v15 }
  0xff   :  { %3627 = vmatpush3.bf16.msra.mxu1 %v3897_v17  ;;  %3606 = vmatprep.subr.bf16.mxu0 %v3898_v18 }
 0x100   :  { %3628 = vmatprep.subr.bf16.mxu1 %v3899_v19 }
 0x102   :  { %3607 = vmatpush3.bf16.msra.mxu0 %v3900_v20 }
 0x103   :  { %3629 = vmatpush3.bf16.msra.mxu1 %v3901_v21  ;;  %3608 = vmatprep.subr.bf16.mxu0 %v3902_v22 }
 0x104   :  { %v3306_v57 = vpop.f32.mrb[0].mxu0  ;;  %3630 = vmatprep.subr.bf16.mxu1 %v3903_v23 }
 0x105   :  { %v3328_v59 = vpop.f32.mrb[0].mxu1  ;;  %v3307_v61 = vpop.f32.mrb[1].mxu0 }
 0x106   :  { %v3308_v63 = vadd.f32 %v3307_v61, %v3306_v57  ;;  %v3329_v0 = vpop.f32.mrb[1].mxu1  ;;  %v3309_v3 = vpop.f32.mrb[2].mxu0  ;;  %3609 = vmatpush3.bf16.msra.mxu0 %v3904_v24 }
 0x107   :  { %v3330_v2 = vadd.f32 %v3329_v0, %v3328_v59  ;;  %v3331_v5 = vpop.f32.mrb[2].mxu1  ;;  %v3310_v8 = vpop.f32.mrb[3].mxu0  ;;  %3631 = vmatpush3.bf16.msra.mxu1 %v3905_v25  ;;  %3610 = vmatprep.subr.bf16.mxu0 %v3906_v26 }
 0x108   :  { %v3311_v10 = vadd.f32 %v3310_v8, %v3309_v3  ;;  %v3332_v11 = vpop.f32.mrb[3].mxu1  ;;  %3632 = vmatprep.subr.bf16.mxu1 %v3907_v27 }
 0x109   :  { %v4859_v7 = vadd.f32 %v3330_v2, %v3308_v63  ;;  %v3333_v13 = vadd.f32 %v3332_v11, %v3331_v5 }
 0x10a   :  { %3611 = vmatpush3.bf16.msra.mxu0 %v3908_v28 }
 0x10b   :  { %v4873_v16 = vadd.f32 %v3333_v13, %v3311_v10  ;;  %3633 = vmatpush3.bf16.msra.mxu1 %v3909_v29  ;;  %3612 = vmatprep.subr.bf16.mxu0 %v3910_v30  ;;  %v3957_v30 = vmov 0  }
 0x10c   :  { %3634 = vmatprep.subr.bf16.mxu1 %v3911_v31  ;;  %3656 = vset.pattern.permute.xlu0 %v3957_v30  ;;  %v2847_v31 = vlaneseq }
 0x10e   :  { %3613 = vmatpush3.bf16.msra.mxu0 %v3912_v32  ;;  %v3958_v32 = vmov 0.0   ;;  %v4955_v34 = vand.u32 127, %v2847_v31 }
 0x10f   :  { %3635 = vmatpush3.bf16.msra.mxu1 %v3913_v33  ;;  %3644 = vmatprep.subr.mxu0 %v3958_v32  ;;  %v4953_v33 = vshrl.u32 %v2847_v31, 7 }
 0x110   :  { %vm3007_vm6 = vcmp.eq.s32.totalorder %v4955_v34, 1  ;;  %vm3005_vm7 = vcmp.eq.s32.totalorder %v4955_v34, 0 }
 0x111   :  { %2786 = vmatmul.mubr.bf16.vlgmr.msra.gmra.mrb[28].mxu0 %v127_v43  ;;  %vm2851_vm0 = vcmp.le.s32.totalorder %v4953_v33, %v4955_v34 }
 0x112   :  { %2827 = vmatmul.mubr.bf16.vlgmr.msra.gmra.mrb[28].mxu1 %v129_v45  ;;  %3645 = vmatpush3.msk.msra.mxu0 %vm2851_vm0, %v3959_v35  ;;  %v2835_v35 = vstv %s29_s0 }
 0x113   :  { %3646 = vmatprep.mubr.msk.f32.mxu0 %vm3960_vm1, %v3958_v32 }
 0x124   :  { %v3350_v46 = vpop.f32.mrb[4].mxu0 }
 0x125   :  { %v3372_v47 = vpop.f32.mrb[4].mxu1  ;;  %v3351_v48 = vpop.f32.mrb[5].mxu0 }
 0x126   :  { %v3352_v49 = vadd.f32 %v3351_v48, %v3350_v46  ;;  %v3373_v50 = vpop.f32.mrb[5].mxu1  ;;  %v3353_v51 = vpop.f32.mrb[6].mxu0 }
 0x127   :  { %v3374_v52 = vadd.f32 %v3373_v50, %v3372_v47  ;;  %v3375_v53 = vpop.f32.mrb[6].mxu1  ;;  %v3354_v54 = vpop.f32.mrb[7].mxu0 }
 0x128   :  { %v2296_v55 = vadd.f32 %v3352_v49, %v4859_v7  ;;  %v3355_v56 = vadd.f32 %v3354_v54, %v3353_v51  ;;  %v3376_v57 = vpop.f32.mrb[7].mxu1 }
 0x129   :  { %v3377_v58 = vadd.f32 %v3376_v57, %v3375_v53 }
 0x12a   :  { %v2337_v59 = vadd.f32 %v3374_v52, %v2296_v55  ;;  %v2299_v60 = vadd.f32 %v3355_v56, %v4873_v16 }
 0x12c   :  { %v2340_v61 = vadd.f32 %v3377_v58, %v2299_v60 }
 0x144   :  { %v3394_v62 = vpop.f32.mrb[8].mxu0 }
 0x145   :  { %v3416_v63 = vpop.f32.mrb[8].mxu1  ;;  %v3395_v0 = vpop.f32.mrb[9].mxu0 }
 0x146   :  { %v3417_v1 = vpop.f32.mrb[9].mxu1  ;;  %v3396_v2 = vadd.f32 %v3395_v0, %v3394_v62  ;;  %v3397_v4 = vpop.f32.mrb[10].mxu0 }
 0x147   :  { %v3418_v3 = vadd.f32 %v3417_v1, %v3416_v63  ;;  %v3419_v5 = vpop.f32.mrb[10].mxu1  ;;  %v3398_v6 = vpop.f32.mrb[11].mxu0 }
 0x148   :  { %v3420_v8 = vpop.f32.mrb[11].mxu1  ;;  %v2378_v9 = vadd.f32 %v3396_v2, %v2337_v59  ;;  %v3399_v10 = vadd.f32 %v3398_v6, %v3397_v4 }
 0x149   :  { %v3421_v7 = vadd.f32 %v3420_v8, %v3419_v5 }
 0x14a   :  { %v2419_v11 = vadd.f32 %v3418_v3, %v2378_v9  ;;  %v2381_v12 = vadd.f32 %v3399_v10, %v2340_v61 }
 0x14c   :  { %v2422_v13 = vadd.f32 %v3421_v7, %v2381_v12 }
 0x164   :  { %v3438_v14 = vpop.f32.mrb[12].mxu0 }
 0x165   :  { %v3460_v15 = vpop.f32.mrb[12].mxu1  ;;  %v3439_v16 = vpop.f32.mrb[13].mxu0 }
 0x166   :  { %v3440_v17 = vadd.f32 %v3439_v16, %v3438_v14  ;;  %v3461_v18 = vpop.f32.mrb[13].mxu1  ;;  %v3441_v19 = vpop.f32.mrb[14].mxu0 }
 0x167   :  { %v3462_v20 = vadd.f32 %v3461_v18, %v3460_v15  ;;  %v3463_v21 = vpop.f32.mrb[14].mxu1  ;;  %v3442_v22 = vpop.f32.mrb[15].mxu0 }
 0x168   :  { %v2460_v23 = vadd.f32 %v3440_v17, %v2419_v11  ;;  %v3443_v24 = vadd.f32 %v3442_v22, %v3441_v19  ;;  %v3464_v25 = vpop.f32.mrb[15].mxu1 }
 0x169   :  { %v3465_v26 = vadd.f32 %v3464_v25, %v3463_v21 }
 0x16a   :  { %v2501_v27 = vadd.f32 %v3462_v20, %v2460_v23  ;;  %v2463_v28 = vadd.f32 %v3443_v24, %v2422_v13 }
 0x16c   :  { %v2504_v29 = vadd.f32 %v3465_v26, %v2463_v28 }
 0x184   :  { %v3482_v36 = vpop.f32.mrb[16].mxu0 }
 0x185   :  { %v3504_v37 = vpop.f32.mrb[16].mxu1  ;;  %v3483_v38 = vpop.f32.mrb[17].mxu0 }
 0x186   :  { %v3484_v39 = vadd.f32 %v3483_v38, %v3482_v36  ;;  %v3505_v40 = vpop.f32.mrb[17].mxu1  ;;  %v3485_v41 = vpop.f32.mrb[18].mxu0 }
 0x187   :  { %v3506_v42 = vadd.f32 %v3505_v40, %v3504_v37  ;;  %v3507_v43 = vpop.f32.mrb[18].mxu1  ;;  %v3486_v44 = vpop.f32.mrb[19].mxu0 }
 0x188   :  { %v2542_v45 = vadd.f32 %v3484_v39, %v2501_v27  ;;  %v3487_v46 = vadd.f32 %v3486_v44, %v3485_v41  ;;  %v3508_v47 = vpop.f32.mrb[19].mxu1  ;;  %v2838_v39 = vstv %s3027_s12 }
 0x189   :  { %v3509_v48 = vadd.f32 %v3508_v47, %v3507_v43 }
 0x18a   :  { %v2583_v49 = vadd.f32 %v3506_v42, %v2542_v45  ;;  %v2545_v50 = vadd.f32 %v3487_v46, %v2504_v29  ;;  %v2841_v42 = vstv %s3028_s13 }
 0x18c   :  { %v2586_v51 = vadd.f32 %v3509_v48, %v2545_v50 }
 0x1a4   :  { %v3526_v52 = vpop.f32.mrb[20].mxu0 }
 0x1a5   :  { %v3548_v53 = vpop.f32.mrb[20].mxu1  ;;  %v3527_v54 = vpop.f32.mrb[21].mxu0 }
 0x1a6   :  { %v3549_v55 = vpop.f32.mrb[21].mxu1  ;;  %v3528_v56 = vadd.f32 %v3527_v54, %v3526_v52  ;;  %v3529_v58 = vpop.f32.mrb[22].mxu0 }
 0x1a7   :  { %v3550_v57 = vadd.f32 %v3549_v55, %v3548_v53  ;;  %v3551_v59 = vpop.f32.mrb[22].mxu1  ;;  %v3530_v60 = vpop.f32.mrb[23].mxu0  ;;  %v2946_v55 = vcvt.s32.f32 %v4955_v34 }
 0x1a8   :  { %v3552_v61 = vpop.f32.mrb[23].mxu1  ;;  %v2624_v62 = vadd.f32 %v3528_v56, %v2583_v49  ;;  %v3531_v63 = vadd.f32 %v3530_v60, %v3529_v58  ;;  %v2864_v49 = vsub.s32 %v4955_v34, %v4953_v33  ;;  %v2947_v56 = vstv %s3029_s14 }
 0x1a9   :  { %v3553_v0 = vadd.f32 %v3552_v61, %v3551_v59 }
 0x1aa   :  { %v2665_v1 = vadd.f32 %v3550_v57, %v2624_v62  ;;  %v2627_v2 = vadd.f32 %v3531_v63, %v2586_v51  ;;  %v2956_v62 = vstv %s3030_s15 }
 0x1ac   :  { %v2668_v3 = vadd.f32 %v3553_v0, %v2627_v2  ;;  %v3961_v2 = vmov 1  }
 0x1c4   :  { %v3570_v4 = vpop.f32.mrb[24].mxu0 }
 0x1c5   :  { %v3592_v5 = vpop.f32.mrb[24].mxu1  ;;  %v3571_v6 = vpop.f32.mrb[25].mxu0 }
 0x1c6   :  { %v3572_v8 = vadd.f32 %v3571_v6, %v3570_v4  ;;  %v3593_v9 = vpop.f32.mrb[25].mxu1  ;;  %v3573_v10 = vpop.f32.mrb[26].mxu0  ;;  %v2967_v4 = vsub.s32 0, %v4953_v33 }
 0x1c7   :  { %v3594_v7 = vadd.f32 %v3593_v9, %v3592_v5  ;;  %v3595_v11 = vpop.f32.mrb[26].mxu1  ;;  %v3574_v12 = vpop.f32.mrb[27].mxu0 }
 0x1c8   :  { %v2706_v13 = vadd.f32 %v3572_v8, %v2665_v1  ;;  %v3575_v14 = vadd.f32 %v3574_v12, %v3573_v10  ;;  %v3596_v15 = vpop.f32.mrb[27].mxu1  ;;  %v2844_v10 = vstv %s3026_s16 }
 0x1c9   :  { %v3597_v16 = vadd.f32 %v3596_v15, %v3595_v11 }
 0x1ca   :  { %v2747_v17 = vadd.f32 %v3594_v7, %v2706_v13  ;;  %v2709_v18 = vadd.f32 %v3575_v14, %v2668_v3  ;;  %v2974_v3 = vsub.s32 1, %v4953_v33 }
 0x1cc   :  { %v2750_v19 = vadd.f32 %v3597_v16, %v2709_v18 }
 0x1e4   :  { %v3614_v20 = vpop.f32.mrb[28].mxu0 }
 0x1e5   :  { %v3636_v21 = vpop.f32.mrb[28].mxu1  ;;  %v3615_v22 = vpop.f32.mrb[29].mxu0 }
 0x1e6   :  { %v3616_v23 = vadd.f32 %v3615_v22, %v3614_v20  ;;  %v3637_v24 = vpop.f32.mrb[29].mxu1  ;;  %v3617_v25 = vpop.f32.mrb[30].mxu0 }
 0x1e7   :  { %v3638_v26 = vadd.f32 %v3637_v24, %v3636_v21  ;;  %v3639_v27 = vpop.f32.mrb[30].mxu1  ;;  %v3618_v28 = vpop.f32.mrb[31].mxu0 }
 0x1e8   :  { %v2788_v29 = vadd.f32 %v3616_v23, %v2747_v17  ;;  %v3619_v30 = vadd.f32 %v3618_v28, %v3617_v25  ;;  %v3640_v31 = vpop.f32.mrb[31].mxu1 }
 0x1e9   :  { %v3641_v36 = vadd.f32 %v3640_v31, %v3639_v27 }
 0x1ea   :  { %v2829_v37 = vadd.f32 %v3638_v26, %v2788_v29  ;;  %v2791_v38 = vadd.f32 %v3619_v30, %v2750_v19 }
 0x1ec   :  { %v2836_v40 = vadd.f32 %v2835_v35, %v2829_v37  ;;  %v2832_v41 = vadd.f32 %v3641_v36, %v2791_v38  ;;  %v2845_v7 = vadd.f32 %v2844_v10, %v2829_v37 }
 0x1ee   :  { %v2837_v43 = vadd.f32 %v2835_v35, %v2832_v41  ;;  %v2839_v44 = vmul.f32 %v2838_v39, %v2836_v40  ;;  %v2846_v14 = vadd.f32 %v2844_v10, %v2832_v41 }
 0x1f0   :  { %v2840_v45 = vmul.f32 %v2838_v39, %v2837_v43  ;;  %v2842_v46 = vadd.f32 %v2841_v42, %v2839_v44 }
 0x1f2   :  { %2857 = vperm.xlu0 %3656, %v2842_v46   ;;  %v2843_v47 = vadd.f32 %v2841_v42, %v2840_v45 }
 0x1f6   :  { %2860 = vperm.xlu0 %3656, %v2843_v47  }
 0x1fa   :  { %3657 = vset.pattern.permute.xlu0 %v3961_v2 }
 0x271   :  { %v2858_v48 = vpop.permute.xlu0 %2857 }
 0x272   :  { %v2865_v51 = vrot.slane %v2858_v48, %v2864_v49 }
 0x275   :  { %v2861_v50 = vpop.permute.xlu0 %2860 }
 0x276   :  { %v2869_v52 = vrot.slane %v2861_v50, %v2864_v49 }
 0x278   :  { %v2871_v53 = vsel %vm2870_vm2, %v2869_v52, %v2865_v51 }
 0x279   :  { %3647 = vmatmul.mubr.msk.f32.vlgmr.msra.gmra.mrb[32].mxu0 %vm2872_vm3, %v2871_v53 }
 0x34c   :  { %v2941_v54 = vpop.f32.mrb[32].mxu0 }
 0x34d   :  { %v2945_v57 = vand.u32 2147483647, %v2941_v54  ;;  %v3648_v58 = vpop.f32.mrb[33].mxu0 }
 0x34f   :  { %vm2948_vm5 = vcmp.ge.f32.partialorder %v2945_v57, %v2947_v56 }
 0x350   :  { %v2949_v32 = vsel %vm2948_vm5, %v2946_v55, 7.0 }
 0x351   :  { %v2951_v59 = vsel %vm2950_vm4, %v2949_v32, inf }
 0x352   :  { %2952 = vmin.xlane.f32.xlu1 %v2951_v59 }
 0x3df   :  { %v2953_v60 = vpop.xlane.xlu1 %2952 }
 0x3e0   :  { %v2954_v61 = vsub.f32 %v2953_v60, %v2946_v55  ;;  %v3008_v25 = vsel %vm3007_vm6, %v2953_v60, 0.0 }
 0x3e2   :  { %v2955_v63 = vmul.f32 %v2954_v61, %v2954_v61 }
 0x3e4   :  { %v2957_v0 = vmul.f32 %v2956_v62, %v2955_v63 }
 0x3e6   :  { %v2958_v1 = vmul.f32 1.442695, %v2957_v0 }
 0x3e8   :  { %3914 = vpow2.f32 %v2958_v1 }
 0x3f2   :  { %v3915_v5 = vpop.eup %3914 }
 0x3f3   :  { %v2975_v6 = vrot.slane %v3915_v5, %v2974_v3  ;;  %v2968_v8 = vrot.slane %v3915_v5, %v2967_v4  ;;  %v2960_v9 = vsel %vm2950_vm4, %v3915_v5, 0.0 }
 0x3f5   :  { %2977 = vbcast.lane.b32.xlu0 %v2975_v6, 256  ;;  %2970 = vbcast.lane.b32.xlu1 %v2968_v8, 256 }
 0x419   :  { %2961 = vadd.xlane.f32.xlu1 %v2960_v9 }
 0x467   :  { %v2971_v11 = vpop.permute.xlu1 %2970  ;;  %v2978_v13 = vpop.permute.xlu0 %2977 }
 0x468   :  { %v2981_v12 = vmul.f32 %v2971_v11, %v2845_v7  ;;  %v2982_v15 = vmul.f32 %v2978_v13, %v2846_v14 }
 0x46a   :  { %2986 = vperm.xlu0 %3657, %v2981_v12  }
 0x46e   :  { %2989 = vperm.xlu0 %3657, %v2982_v15  }
 0x4a6   :  { %v2962_v21 = vpop.xlane.xlu1 %2961 }
 0x4a7   :  { %3916 = vrcp.f32 %v2962_v21 }
 0x4b1   :  { %v3917_v22 = vpop.eup %3916 }
 0x4e9   :  { %v2987_v16 = vpop.permute.xlu0 %2986 }
 0x4ea   :  { %v2994_v17 = vrot.slane %v2987_v16, %v2864_v49 }
 0x4ed   :  { %v2990_v33 = vpop.permute.xlu0 %2989 }
 0x4ee   :  { %v2998_v18 = vrot.slane %v2990_v33, %v2864_v49 }
 0x4f0   :  { %v2999_v19 = vsel %vm2870_vm2, %v2998_v18, %v2994_v17 }
 0x4f1   :  { %v3001_v20 = vsel %vm2950_vm4, %v2999_v19, 0.0 }
 0x4f2   :  { %3002 = vadd.xlane.f32.xlu0 %v3001_v20 }
 0x57f   :  { %v3003_v23 = vpop.xlane.xlu0 %3002 }
 0x580   :  { %v3004_v24 = vmul.f32 %v3917_v22, %v3003_v23 }
 0x582   :  { %v3006_v26 = vsel %vm3005_vm7, %v3004_v24, 0.0 }
 0x583   :  { %v3009_v27 = vadd.f32 %v3008_v25, %v3006_v26 }
 0x585   :  { %3010 = vst [vmem:[#allocation5] sm:$0x3] %v3009_v27 }
 0x586   :  { %3941 = shalt.err (!%p3938_p9)
}
 0x587   :  { %s3942_s21 = scalar_lea.hbm %s4987_s3, 32 }
 0x588   :  { %p3943_p10 = scmp.ne.s32.totalorder %s4987_s3, %s3942_s21  ;;  %p3946_p11 = scmp.lt.u32.totalorder %s3942_s21, %s4987_s3 }
 0x58a   :  { %p3948_p12 = pnand %p3946_p11, %p3943_p10 }
 0x58c   :  { %3951 = shalt.err (!%p3948_p12)
}
 0x58d   :  { %3020 = dma.vmem_to_hbm [thread:$0]  %s3018_s18, 32, %s4987_s3, [#allocation3]  }
 0x58e   :  { %3954 = dma.done.wait [#allocation3], 32  }
 0x58f   :  { %3955 = vsyncadd [#allocation3], 4294967264 }
 0x590   :  { %3024 = vsyncpa [#allocation3], 1 }
 0x591   :  { %3025 = vsyncpa [#allocation4], 1 }

</bundles_post_ra>
